<compile_context>
chip_gen: v7x
topology: tpu7x:2x2x1
jax: 0.10.0
libtpu: 0.0.40
codegen_flags: <defaults>
</compile_context>

<pallas_src>
import jax
import jax.numpy as jnp
from jax import lax
from jax.experimental import pallas as pl
from jax.experimental.pallas import tpu as pltpu


def policy_kernel(xt_ref, w1t_ref, b1_ref, w2_ref, b2_ref, ot_ref):
    # xt: [F, TB]   w1t: [H, F]   b1: [H, 1]   w2: [H, O]   b2: [O, 1]   ot: [O, TB]
    F, TB = xt_ref.shape
    H, O = w2_ref.shape

    # Lane-chunk the batch axis so h/prod stay small regardless of tile_b.
    CHUNK = 256 if TB % 256 == 0 else 128
    n_chunks = TB // CHUNK

    # Hoisted resident loads (weights/biases are identical every chunk & step).
    w1t = w1t_ref[...]                                  # [H, F]
    b1 = b1_ref[...]                                    # [H, 1]
    w2 = w2_ref[...]                                    # [H, O]
    b2 = b2_ref[...]                                    # [O, 1]

    def body(c, carry):
        off = pl.multiple_of(c * CHUNK, CHUNK)
        xt = xt_ref[:, pl.ds(off, CHUNK)]               # [F, CHUNK] lane-dense slab

        # ---- layer 1 (K = F = 4): unrolled broadcast-FMAs on the VPU ----
        h = w1t[:, 0:1] * xt[0:1, :]                    # [H,1]*[1,CHUNK] -> [H,CHUNK]
        for k in range(1, F):                           # static unroll, F tiny
            h = h + w1t[:, k:k + 1] * xt[k:k + 1, :]
        h = h + b1                                      # bias broadcast over lanes
        h = jnp.maximum(h, 0.01 * h)                    # LeakyReLU(0.01), single vmax

        # ---- layer 2 (K = H = 32, O = 2): mul + XLU sublane reduce per output ----
        for o in range(O):                              # static unroll, O = 2
            prod = w2[:, o:o + 1] * h                   # [H, CHUNK]   (VPU)
            row = jnp.sum(prod, axis=0, keepdims=True)  # [1, CHUNK]   (XLU reduce)
            row = row + b2[o:o + 1, :]                  # [1,1] broadcast
            # Direct per-row store: no concat, lane-dense vst.
            ot_ref[o:o + 1, pl.ds(off, CHUNK)] = jnp.tanh(row).astype(ot_ref.dtype)
        return carry

    lax.fori_loop(0, n_chunks, body, None, unroll=True)


def policy_forward_tb(state_t, w1, b1, w2, b2, *, tile_b=1024):
    """Primary API, no wrapper layout passes.

    state_t: [F, B] f32 (batch on the fast axis); w1: [F, H]; b1: [H];
    w2: [H, O]; b2: [O].  Returns [O, B] f32.
    """
    F, B = state_t.shape
    H = w1.shape[1]
    O = w2.shape[1]
    assert tile_b % 128 == 0, "tile_b must be a multiple of the 128-lane width"

    # Don't allocate a block bigger than (128-rounded) B; ragged edge is masked.
    tb = min(tile_b, ((B + 127) // 128) * 128)
    grid = (pl.cdiv(B, tb),)

    # Tiny one-time weight reshapes (128 B); not per-element HBM traffic.
    w1t = w1.T                                          # [H, F]
    b1c = b1.reshape(H, 1)
    b2c = b2.reshape(O, 1)

    return pl.pallas_call(
        policy_kernel,
        out_shape=jax.ShapeDtypeStruct((O, B), jnp.float32),
        grid=grid,
        in_specs=[
            pl.BlockSpec((F, tb), lambda i: (0, i)),    # state tile (streams over grid)
            pl.BlockSpec((H, F), lambda i: (0, 0)),     # w1^T (resident)
            pl.BlockSpec((H, 1), lambda i: (0, 0)),     # b1   (resident)
            pl.BlockSpec((H, O), lambda i: (0, 0)),     # w2   (resident)
            pl.BlockSpec((O, 1), lambda i: (0, 0)),     # b2   (resident)
        ],
        out_specs=pl.BlockSpec((O, tb), lambda i: (0, i)),
        compiler_params=pltpu.CompilerParams(
            dimension_semantics=("parallel",),          # batch axis -> 2 TCs on v7x
        ),
    )(state_t, w1t, b1c, w2, b2c)


def policy_forward(state, w1, b1, w2, b2, *, tile_b=1024):
    """PyTorch-layout convenience: state [B, F] -> out [B, O].

    The two .T passes here are extra HBM read+write outside the kernel;
    rollout loops should keep data in [F, B] and call policy_forward_tb.
    """
    out_t = policy_forward_tb(state.T, w1, b1, w2, b2, tile_b=tile_b)
    return out_t.T


def init_policy_params(key, input_size=4, hidden_size=32, output_size=2):
    """nn.Linear-style init (uniform +-1/sqrt(fan_in)); weights stored as [in, out]."""
    k1, k2, k3, k4 = jax.random.split(key, 4)
    bound1 = 1.0 / jnp.sqrt(jnp.float32(input_size))
    bound2 = 1.0 / jnp.sqrt(jnp.float32(hidden_size))
    w1 = jax.random.uniform(k1, (input_size, hidden_size), jnp.float32, -bound1, bound1)
    b1 = jax.random.uniform(k2, (hidden_size,), jnp.float32, -bound1, bound1)
    w2 = jax.random.uniform(k3, (hidden_size, output_size), jnp.float32, -bound2, bound2)
    b2 = jax.random.uniform(k4, (output_size,), jnp.float32, -bound2, bound2)
    return w1, b1, w2, b2


def _reference(state, w1, b1, w2, b2):
    # Exact-f32 reference (HIGHEST precision so XLA doesn't use a bf16 pass).
    h = jnp.einsum("bk,kh->bh", state, w1, precision=jax.lax.Precision.HIGHEST) + b1
    h = jnp.where(h >= 0, h, 0.01 * h)
    y = jnp.einsum("bh,ho->bo", h, w2, precision=jax.lax.Precision.HIGHEST) + b2
    return jnp.tanh(y)


if __name__ == "__main__":
    key = jax.random.PRNGKey(0)
    k_params, k_state, k_ragged = jax.random.split(key, 3)

    input_size, hidden_size, output_size = 4, 32, 2
    w1, b1, w2, b2 = init_policy_params(k_params, input_size, hidden_size, output_size)

    # --- main path: rollout states kept in [F, B] layout end-to-end ---
    batch = 2048
    state_t = jax.random.normal(k_state, (input_size, batch), dtype=jnp.float32)
    out_t = jax.block_until_ready(
        policy_forward_tb(state_t, w1, b1, w2, b2, tile_b=1024))   # grid = (2,)
    ref_t = _reference(state_t.T, w1, b1, w2, b2).T
    assert out_t.shape == (output_size, batch)
    assert jnp.allclose(out_t, ref_t, atol=1e-5, rtol=1e-5), \
        float(jnp.max(jnp.abs(out_t - ref_t)))

    # --- ragged batch: no pad/slice, Pallas masks the edge block ---
    batch_r = 1000
    state_r = jax.random.normal(k_ragged, (input_size, batch_r), dtype=jnp.float32)
    out_r = jax.block_until_ready(
        policy_forward_tb(state_r, w1, b1, w2, b2, tile_b=512))    # grid = (2,), edge masked
    ref_r = _reference(state_r.T, w1, b1, w2, b2).T
    assert out_r.shape == (output_size, batch_r)
    assert jnp.allclose(out_r, ref_r, atol=1e-5, rtol=1e-5)

    # --- PyTorch-layout compatibility wrapper at a tiny batch ---
    small_state = state_t.T[:8]                                    # [8, 4]
    out_small = jax.block_until_ready(policy_forward(small_state, w1, b1, w2, b2))
    ref_small = _reference(small_state, w1, b1, w2, b2)
    assert out_small.shape == (8, output_size)
    assert jnp.allclose(out_small, ref_small, atol=1e-5, rtol=1e-5)

    # TODO(synk): Policy.sample (Normal sampling + log_prob) and decay_variance are
    # stochastic/stateful glue outside forward(); they could be fused in-kernel with
    # pltpu.prng_seed/prng_random_bits + stochastic sampling if the actor loop needs it.
    print("KERNEL_OK")
</pallas_src>

<mosaic_0001>
module attributes {stable_mosaic.version = 11 : i64} {
  func.func @policy_kernel(%arg0: i32, %arg1: memref<4x1024xf32, #tpu.memory_space<vmem>>, %arg2: memref<32x4xf32, #tpu.memory_space<vmem>>, %arg3: memref<32x1xf32, #tpu.memory_space<vmem>>, %arg4: memref<32x2xf32, #tpu.memory_space<vmem>>, %arg5: memref<2x1xf32, #tpu.memory_space<vmem>>, %arg6: memref<2x1024xf32, #tpu.memory_space<vmem>>) attributes {dimension_semantics = [#tpu.dimension_semantics<parallel>], iteration_bounds = array<i64: 2>, scalar_prefetch = 0 : i64, scratch_operands = 0 : i64, tpu.core_type = #tpu.core_type<tc>, window_params = [{transform_indices = @transform_0, window_bounds = array<i64: 4, 1024>}, {pipeline_mode = #tpu.pipeline_mode<synchronous>, transform_indices = @transform_1, window_bounds = array<i64: 32, 4>}, {pipeline_mode = #tpu.pipeline_mode<synchronous>, transform_indices = @transform_2, window_bounds = array<i64: 32, 1>}, {pipeline_mode = #tpu.pipeline_mode<synchronous>, transform_indices = @transform_3, window_bounds = array<i64: 32, 2>}, {pipeline_mode = #tpu.pipeline_mode<synchronous>, transform_indices = @transform_4, window_bounds = array<i64: 2, 1>}, {transform_indices = @transform_5, window_bounds = array<i64: 2, 1024>}]} {
    %c0 = arith.constant 0 : index
    %c0_0 = arith.constant 0 : index
    %0 = vector.load %arg2[%c0, %c0_0] : memref<32x4xf32, #tpu.memory_space<vmem>>, vector<32x4xf32>
    %c0_1 = arith.constant 0 : index
    %c0_2 = arith.constant 0 : index
    %1 = vector.load %arg3[%c0_1, %c0_2] : memref<32x1xf32, #tpu.memory_space<vmem>>, vector<32x1xf32>
    %c0_3 = arith.constant 0 : index
    %c0_4 = arith.constant 0 : index
    %2 = vector.load %arg4[%c0_3, %c0_4] : memref<32x2xf32, #tpu.memory_space<vmem>>, vector<32x2xf32>
    %c0_5 = arith.constant 0 : index
    %c0_6 = arith.constant 0 : index
    %3 = vector.load %arg5[%c0_5, %c0_6] : memref<2x1xf32, #tpu.memory_space<vmem>>, vector<2x1xf32>
    %c0_i32 = arith.constant 0 : i32
    %c256_i32 = arith.constant 256 : i32
    %4 = arith.muli %c0_i32, %c256_i32 : i32
    %5 = tpu.assume_multiple %4, 256 : i32
    %c0_7 = arith.constant 0 : index
    %6 = arith.index_cast %5 : i32 to index
    %7 = vector.load %arg1[%c0_7, %6] : memref<4x1024xf32, #tpu.memory_space<vmem>>, vector<4x256xf32>
    %8 = vector.extract_strided_slice %0 {offsets = [0, 0], sizes = [32, 1], strides = [1, 1]} : vector<32x4xf32> to vector<32x1xf32>
    %9 = vector.extract_strided_slice %7 {offsets = [0, 0], sizes = [1, 256], strides = [1, 1]} : vector<4x256xf32> to vector<1x256xf32>
    %10 = vector.broadcast %8 : vector<32x1xf32> to vector<32x256xf32>
    %11 = vector.broadcast %9 : vector<1x256xf32> to vector<32x256xf32>
    %12 = arith.mulf %10, %11 : vector<32x256xf32>
    %13 = vector.extract_strided_slice %0 {offsets = [0, 1], sizes = [32, 1], strides = [1, 1]} : vector<32x4xf32> to vector<32x1xf32>
    %14 = vector.extract_strided_slice %7 {offsets = [1, 0], sizes = [1, 256], strides = [1, 1]} : vector<4x256xf32> to vector<1x256xf32>
    %15 = vector.broadcast %13 : vector<32x1xf32> to vector<32x256xf32>
    %16 = vector.broadcast %14 : vector<1x256xf32> to vector<32x256xf32>
    %17 = arith.mulf %15, %16 : vector<32x256xf32>
    %18 = arith.addf %12, %17 : vector<32x256xf32>
    %19 = vector.extract_strided_slice %0 {offsets = [0, 2], sizes = [32, 1], strides = [1, 1]} : vector<32x4xf32> to vector<32x1xf32>
    %20 = vector.extract_strided_slice %7 {offsets = [2, 0], sizes = [1, 256], strides = [1, 1]} : vector<4x256xf32> to vector<1x256xf32>
    %21 = vector.broadcast %19 : vector<32x1xf32> to vector<32x256xf32>
    %22 = vector.broadcast %20 : vector<1x256xf32> to vector<32x256xf32>
    %23 = arith.mulf %21, %22 : vector<32x256xf32>
    %24 = arith.addf %18, %23 : vector<32x256xf32>
    %25 = vector.extract_strided_slice %0 {offsets = [0, 3], sizes = [32, 1], strides = [1, 1]} : vector<32x4xf32> to vector<32x1xf32>
    %26 = vector.extract_strided_slice %7 {offsets = [3, 0], sizes = [1, 256], strides = [1, 1]} : vector<4x256xf32> to vector<1x256xf32>
    %27 = vector.broadcast %25 : vector<32x1xf32> to vector<32x256xf32>
    %28 = vector.broadcast %26 : vector<1x256xf32> to vector<32x256xf32>
    %29 = arith.mulf %27, %28 : vector<32x256xf32>
    %30 = arith.addf %24, %29 : vector<32x256xf32>
    %31 = vector.broadcast %1 : vector<32x1xf32> to vector<32x256xf32>
    %32 = arith.addf %30, %31 : vector<32x256xf32>
    %cst = arith.constant 0.00999999977 : f32
    %33 = vector.broadcast %cst : f32 to vector<32x256xf32>
    %34 = arith.mulf %33, %32 : vector<32x256xf32>
    %35 = arith.maximumf %32, %34 : vector<32x256xf32>
    %36 = vector.extract_strided_slice %2 {offsets = [0, 0], sizes = [32, 1], strides = [1, 1]} : vector<32x2xf32> to vector<32x1xf32>
    %37 = vector.broadcast %36 : vector<32x1xf32> to vector<32x256xf32>
    %38 = arith.mulf %37, %35 : vector<32x256xf32>
    %cst_8 = arith.constant dense<0.000000e+00> : vector<256xf32>
    %39 = vector.multi_reduction <add>, %38, %cst_8 [0] : vector<32x256xf32> to vector<256xf32>
    %40 = vector.shape_cast %39 : vector<256xf32> to vector<1x256xf32>
    %41 = vector.extract_strided_slice %3 {offsets = [0, 0], sizes = [1, 1], strides = [1, 1]} : vector<2x1xf32> to vector<1x1xf32>
    %42 = vector.broadcast %41 : vector<1x1xf32> to vector<1x256xf32>
    %43 = arith.addf %40, %42 : vector<1x256xf32>
    %44 = math.tanh %43 : vector<1x256xf32>
    %c0_9 = arith.constant 0 : index
    %45 = arith.index_cast %5 : i32 to index
    %46 = vector.load %arg6[%c0_9, %45] : memref<2x1024xf32, #tpu.memory_space<vmem>>, vector<1x256xf32>
    tpu.vector_store %arg6[%c0_9, %45], %44 {strides = array<i32>} : memref<2x1024xf32, #tpu.memory_space<vmem>>, vector<1x256xf32>,
    %47 = vector.extract_strided_slice %2 {offsets = [0, 1], sizes = [32, 1], strides = [1, 1]} : vector<32x2xf32> to vector<32x1xf32>
    %48 = vector.broadcast %47 : vector<32x1xf32> to vector<32x256xf32>
    %49 = arith.mulf %48, %35 : vector<32x256xf32>
    %cst_10 = arith.constant dense<0.000000e+00> : vector<256xf32>
    %50 = vector.multi_reduction <add>, %49, %cst_10 [0] : vector<32x256xf32> to vector<256xf32>
    %51 = vector.shape_cast %50 : vector<256xf32> to vector<1x256xf32>
    %52 = vector.extract_strided_slice %3 {offsets = [1, 0], sizes = [1, 1], strides = [1, 1]} : vector<2x1xf32> to vector<1x1xf32>
    %53 = vector.broadcast %52 : vector<1x1xf32> to vector<1x256xf32>
    %54 = arith.addf %51, %53 : vector<1x256xf32>
    %55 = math.tanh %54 : vector<1x256xf32>
    %c1 = arith.constant 1 : index
    %56 = arith.index_cast %5 : i32 to index
    %57 = vector.load %arg6[%c1, %56] : memref<2x1024xf32, #tpu.memory_space<vmem>>, vector<1x256xf32>
    tpu.vector_store %arg6[%c1, %56], %55 {strides = array<i32>} : memref<2x1024xf32, #tpu.memory_space<vmem>>, vector<1x256xf32>,
    %c1_i32 = arith.constant 1 : i32
    %c256_i32_11 = arith.constant 256 : i32
    %58 = arith.muli %c1_i32, %c256_i32_11 : i32
    %59 = tpu.assume_multiple %58, 256 : i32
    %c0_12 = arith.constant 0 : index
    %60 = arith.index_cast %59 : i32 to index
    %61 = vector.load %arg1[%c0_12, %60] : memref<4x1024xf32, #tpu.memory_space<vmem>>, vector<4x256xf32>
    %62 = vector.extract_strided_slice %0 {offsets = [0, 0], sizes = [32, 1], strides = [1, 1]} : vector<32x4xf32> to vector<32x1xf32>
    %63 = vector.extract_strided_slice %61 {offsets = [0, 0], sizes = [1, 256], strides = [1, 1]} : vector<4x256xf32> to vector<1x256xf32>
    %64 = vector.broadcast %62 : vector<32x1xf32> to vector<32x256xf32>
    %65 = vector.broadcast %63 : vector<1x256xf32> to vector<32x256xf32>
    %66 = arith.mulf %64, %65 : vector<32x256xf32>
    %67 = vector.extract_strided_slice %0 {offsets = [0, 1], sizes = [32, 1], strides = [1, 1]} : vector<32x4xf32> to vector<32x1xf32>
    %68 = vector.extract_strided_slice %61 {offsets = [1, 0], sizes = [1, 256], strides = [1, 1]} : vector<4x256xf32> to vector<1x256xf32>
    %69 = vector.broadcast %67 : vector<32x1xf32> to vector<32x256xf32>
    %70 = vector.broadcast %68 : vector<1x256xf32> to vector<32x256xf32>
    %71 = arith.mulf %69, %70 : vector<32x256xf32>
    %72 = arith.addf %66, %71 : vector<32x256xf32>
    %73 = vector.extract_strided_slice %0 {offsets = [0, 2], sizes = [32, 1], strides = [1, 1]} : vector<32x4xf32> to vector<32x1xf32>
    %74 = vector.extract_strided_slice %61 {offsets = [2, 0], sizes = [1, 256], strides = [1, 1]} : vector<4x256xf32> to vector<1x256xf32>
    %75 = vector.broadcast %73 : vector<32x1xf32> to vector<32x256xf32>
    %76 = vector.broadcast %74 : vector<1x256xf32> to vector<32x256xf32>
    %77 = arith.mulf %75, %76 : vector<32x256xf32>
    %78 = arith.addf %72, %77 : vector<32x256xf32>
    %79 = vector.extract_strided_slice %0 {offsets = [0, 3], sizes = [32, 1], strides = [1, 1]} : vector<32x4xf32> to vector<32x1xf32>
    %80 = vector.extract_strided_slice %61 {offsets = [3, 0], sizes = [1, 256], strides = [1, 1]} : vector<4x256xf32> to vector<1x256xf32>
    %81 = vector.broadcast %79 : vector<32x1xf32> to vector<32x256xf32>
    %82 = vector.broadcast %80 : vector<1x256xf32> to vector<32x256xf32>
    %83 = arith.mulf %81, %82 : vector<32x256xf32>
    %84 = arith.addf %78, %83 : vector<32x256xf32>
    %85 = vector.broadcast %1 : vector<32x1xf32> to vector<32x256xf32>
    %86 = arith.addf %84, %85 : vector<32x256xf32>
    %cst_13 = arith.constant 0.00999999977 : f32
    %87 = vector.broadcast %cst_13 : f32 to vector<32x256xf32>
    %88 = arith.mulf %87, %86 : vector<32x256xf32>
    %89 = arith.maximumf %86, %88 : vector<32x256xf32>
    %90 = vector.extract_strided_slice %2 {offsets = [0, 0], sizes = [32, 1], strides = [1, 1]} : vector<32x2xf32> to vector<32x1xf32>
    %91 = vector.broadcast %90 : vector<32x1xf32> to vector<32x256xf32>
    %92 = arith.mulf %91, %89 : vector<32x256xf32>
    %cst_14 = arith.constant dense<0.000000e+00> : vector<256xf32>
    %93 = vector.multi_reduction <add>, %92, %cst_14 [0] : vector<32x256xf32> to vector<256xf32>
    %94 = vector.shape_cast %93 : vector<256xf32> to vector<1x256xf32>
    %95 = vector.extract_strided_slice %3 {offsets = [0, 0], sizes = [1, 1], strides = [1, 1]} : vector<2x1xf32> to vector<1x1xf32>
    %96 = vector.broadcast %95 : vector<1x1xf32> to vector<1x256xf32>
    %97 = arith.addf %94, %96 : vector<1x256xf32>
    %98 = math.tanh %97 : vector<1x256xf32>
    %c0_15 = arith.constant 0 : index
    %99 = arith.index_cast %59 : i32 to index
    %100 = vector.load %arg6[%c0_15, %99] : memref<2x1024xf32, #tpu.memory_space<vmem>>, vector<1x256xf32>
    tpu.vector_store %arg6[%c0_15, %99], %98 {strides = array<i32>} : memref<2x1024xf32, #tpu.memory_space<vmem>>, vector<1x256xf32>,
    %101 = vector.extract_strided_slice %2 {offsets = [0, 1], sizes = [32, 1], strides = [1, 1]} : vector<32x2xf32> to vector<32x1xf32>
    %102 = vector.broadcast %101 : vector<32x1xf32> to vector<32x256xf32>
    %103 = arith.mulf %102, %89 : vector<32x256xf32>
    %cst_16 = arith.constant dense<0.000000e+00> : vector<256xf32>
    %104 = vector.multi_reduction <add>, %103, %cst_16 [0] : vector<32x256xf32> to vector<256xf32>
    %105 = vector.shape_cast %104 : vector<256xf32> to vector<1x256xf32>
    %106 = vector.extract_strided_slice %3 {offsets = [1, 0], sizes = [1, 1], strides = [1, 1]} : vector<2x1xf32> to vector<1x1xf32>
    %107 = vector.broadcast %106 : vector<1x1xf32> to vector<1x256xf32>
    %108 = arith.addf %105, %107 : vector<1x256xf32>
    %109 = math.tanh %108 : vector<1x256xf32>
    %c1_17 = arith.constant 1 : index
    %110 = arith.index_cast %59 : i32 to index
    %111 = vector.load %arg6[%c1_17, %110] : memref<2x1024xf32, #tpu.memory_space<vmem>>, vector<1x256xf32>
    tpu.vector_store %arg6[%c1_17, %110], %109 {strides = array<i32>} : memref<2x1024xf32, #tpu.memory_space<vmem>>, vector<1x256xf32>,
    %c2_i32 = arith.constant 2 : i32
    %c256_i32_18 = arith.constant 256 : i32
    %112 = arith.muli %c2_i32, %c256_i32_18 : i32
    %113 = tpu.assume_multiple %112, 256 : i32
    %c0_19 = arith.constant 0 : index
    %114 = arith.index_cast %113 : i32 to index
    %115 = vector.load %arg1[%c0_19, %114] : memref<4x1024xf32, #tpu.memory_space<vmem>>, vector<4x256xf32>
    %116 = vector.extract_strided_slice %0 {offsets = [0, 0], sizes = [32, 1], strides = [1, 1]} : vector<32x4xf32> to vector<32x1xf32>
    %117 = vector.extract_strided_slice %115 {offsets = [0, 0], sizes = [1, 256], strides = [1, 1]} : vector<4x256xf32> to vector<1x256xf32>
    %118 = vector.broadcast %116 : vector<32x1xf32> to vector<32x256xf32>
    %119 = vector.broadcast %117 : vector<1x256xf32> to vector<32x256xf32>
    %120 = arith.mulf %118, %119 : vector<32x256xf32>
    %121 = vector.extract_strided_slice %0 {offsets = [0, 1], sizes = [32, 1], strides = [1, 1]} : vector<32x4xf32> to vector<32x1xf32>
    %122 = vector.extract_strided_slice %115 {offsets = [1, 0], sizes = [1, 256], strides = [1, 1]} : vector<4x256xf32> to vector<1x256xf32>
    %123 = vector.broadcast %121 : vector<32x1xf32> to vector<32x256xf32>
    %124 = vector.broadcast %122 : vector<1x256xf32> to vector<32x256xf32>
    %125 = arith.mulf %123, %124 : vector<32x256xf32>
    %126 = arith.addf %120, %125 : vector<32x256xf32>
    %127 = vector.extract_strided_slice %0 {offsets = [0, 2], sizes = [32, 1], strides = [1, 1]} : vector<32x4xf32> to vector<32x1xf32>
    %128 = vector.extract_strided_slice %115 {offsets = [2, 0], sizes = [1, 256], strides = [1, 1]} : vector<4x256xf32> to vector<1x256xf32>
    %129 = vector.broadcast %127 : vector<32x1xf32> to vector<32x256xf32>
    %130 = vector.broadcast %128 : vector<1x256xf32> to vector<32x256xf32>
    %131 = arith.mulf %129, %130 : vector<32x256xf32>
    %132 = arith.addf %126, %131 : vector<32x256xf32>
    %133 = vector.extract_strided_slice %0 {offsets = [0, 3], sizes = [32, 1], strides = [1, 1]} : vector<32x4xf32> to vector<32x1xf32>
    %134 = vector.extract_strided_slice %115 {offsets = [3, 0], sizes = [1, 256], strides = [1, 1]} : vector<4x256xf32> to vector<1x256xf32>
    %135 = vector.broadcast %133 : vector<32x1xf32> to vector<32x256xf32>
    %136 = vector.broadcast %134 : vector<1x256xf32> to vector<32x256xf32>
    %137 = arith.mulf %135, %136 : vector<32x256xf32>
    %138 = arith.addf %132, %137 : vector<32x256xf32>
    %139 = vector.broadcast %1 : vector<32x1xf32> to vector<32x256xf32>
    %140 = arith.addf %138, %139 : vector<32x256xf32>
    %cst_20 = arith.constant 0.00999999977 : f32
    %141 = vector.broadcast %cst_20 : f32 to vector<32x256xf32>
    %142 = arith.mulf %141, %140 : vector<32x256xf32>
    %143 = arith.maximumf %140, %142 : vector<32x256xf32>
    %144 = vector.extract_strided_slice %2 {offsets = [0, 0], sizes = [32, 1], strides = [1, 1]} : vector<32x2xf32> to vector<32x1xf32>
    %145 = vector.broadcast %144 : vector<32x1xf32> to vector<32x256xf32>
    %146 = arith.mulf %145, %143 : vector<32x256xf32>
    %cst_21 = arith.constant dense<0.000000e+00> : vector<256xf32>
    %147 = vector.multi_reduction <add>, %146, %cst_21 [0] : vector<32x256xf32> to vector<256xf32>
    %148 = vector.shape_cast %147 : vector<256xf32> to vector<1x256xf32>
    %149 = vector.extract_strided_slice %3 {offsets = [0, 0], sizes = [1, 1], strides = [1, 1]} : vector<2x1xf32> to vector<1x1xf32>
    %150 = vector.broadcast %149 : vector<1x1xf32> to vector<1x256xf32>
    %151 = arith.addf %148, %150 : vector<1x256xf32>
    %152 = math.tanh %151 : vector<1x256xf32>
    %c0_22 = arith.constant 0 : index
    %153 = arith.index_cast %113 : i32 to index
    %154 = vector.load %arg6[%c0_22, %153] : memref<2x1024xf32, #tpu.memory_space<vmem>>, vector<1x256xf32>
    tpu.vector_store %arg6[%c0_22, %153], %152 {strides = array<i32>} : memref<2x1024xf32, #tpu.memory_space<vmem>>, vector<1x256xf32>,
    %155 = vector.extract_strided_slice %2 {offsets = [0, 1], sizes = [32, 1], strides = [1, 1]} : vector<32x2xf32> to vector<32x1xf32>
    %156 = vector.broadcast %155 : vector<32x1xf32> to vector<32x256xf32>
    %157 = arith.mulf %156, %143 : vector<32x256xf32>
    %cst_23 = arith.constant dense<0.000000e+00> : vector<256xf32>
    %158 = vector.multi_reduction <add>, %157, %cst_23 [0] : vector<32x256xf32> to vector<256xf32>
    %159 = vector.shape_cast %158 : vector<256xf32> to vector<1x256xf32>
    %160 = vector.extract_strided_slice %3 {offsets = [1, 0], sizes = [1, 1], strides = [1, 1]} : vector<2x1xf32> to vector<1x1xf32>
    %161 = vector.broadcast %160 : vector<1x1xf32> to vector<1x256xf32>
    %162 = arith.addf %159, %161 : vector<1x256xf32>
    %163 = math.tanh %162 : vector<1x256xf32>
    %c1_24 = arith.constant 1 : index
    %164 = arith.index_cast %113 : i32 to index
    %165 = vector.load %arg6[%c1_24, %164] : memref<2x1024xf32, #tpu.memory_space<vmem>>, vector<1x256xf32>
    tpu.vector_store %arg6[%c1_24, %164], %163 {strides = array<i32>} : memref<2x1024xf32, #tpu.memory_space<vmem>>, vector<1x256xf32>,
    %c3_i32 = arith.constant 3 : i32
    %c256_i32_25 = arith.constant 256 : i32
    %166 = arith.muli %c3_i32, %c256_i32_25 : i32
    %167 = tpu.assume_multiple %166, 256 : i32
    %c0_26 = arith.constant 0 : index
    %168 = arith.index_cast %167 : i32 to index
    %169 = vector.load %arg1[%c0_26, %168] : memref<4x1024xf32, #tpu.memory_space<vmem>>, vector<4x256xf32>
    %170 = vector.extract_strided_slice %0 {offsets = [0, 0], sizes = [32, 1], strides = [1, 1]} : vector<32x4xf32> to vector<32x1xf32>
    %171 = vector.extract_strided_slice %169 {offsets = [0, 0], sizes = [1, 256], strides = [1, 1]} : vector<4x256xf32> to vector<1x256xf32>
    %172 = vector.broadcast %170 : vector<32x1xf32> to vector<32x256xf32>
    %173 = vector.broadcast %171 : vector<1x256xf32> to vector<32x256xf32>
    %174 = arith.mulf %172, %173 : vector<32x256xf32>
    %175 = vector.extract_strided_slice %0 {offsets = [0, 1], sizes = [32, 1], strides = [1, 1]} : vector<32x4xf32> to vector<32x1xf32>
    %176 = vector.extract_strided_slice %169 {offsets = [1, 0], sizes = [1, 256], strides = [1, 1]} : vector<4x256xf32> to vector<1x256xf32>
    %177 = vector.broadcast %175 : vector<32x1xf32> to vector<32x256xf32>
    %178 = vector.broadcast %176 : vector<1x256xf32> to vector<32x256xf32>
    %179 = arith.mulf %177, %178 : vector<32x256xf32>
    %180 = arith.addf %174, %179 : vector<32x256xf32>
    %181 = vector.extract_strided_slice %0 {offsets = [0, 2], sizes = [32, 1], strides = [1, 1]} : vector<32x4xf32> to vector<32x1xf32>
    %182 = vector.extract_strided_slice %169 {offsets = [2, 0], sizes = [1, 256], strides = [1, 1]} : vector<4x256xf32> to vector<1x256xf32>
    %183 = vector.broadcast %181 : vector<32x1xf32> to vector<32x256xf32>
    %184 = vector.broadcast %182 : vector<1x256xf32> to vector<32x256xf32>
    %185 = arith.mulf %183, %184 : vector<32x256xf32>
    %186 = arith.addf %180, %185 : vector<32x256xf32>
    %187 = vector.extract_strided_slice %0 {offsets = [0, 3], sizes = [32, 1], strides = [1, 1]} : vector<32x4xf32> to vector<32x1xf32>
    %188 = vector.extract_strided_slice %169 {offsets = [3, 0], sizes = [1, 256], strides = [1, 1]} : vector<4x256xf32> to vector<1x256xf32>
    %189 = vector.broadcast %187 : vector<32x1xf32> to vector<32x256xf32>
    %190 = vector.broadcast %188 : vector<1x256xf32> to vector<32x256xf32>
    %191 = arith.mulf %189, %190 : vector<32x256xf32>
    %192 = arith.addf %186, %191 : vector<32x256xf32>
    %193 = vector.broadcast %1 : vector<32x1xf32> to vector<32x256xf32>
    %194 = arith.addf %192, %193 : vector<32x256xf32>
    %cst_27 = arith.constant 0.00999999977 : f32
    %195 = vector.broadcast %cst_27 : f32 to vector<32x256xf32>
    %196 = arith.mulf %195, %194 : vector<32x256xf32>
    %197 = arith.maximumf %194, %196 : vector<32x256xf32>
    %198 = vector.extract_strided_slice %2 {offsets = [0, 0], sizes = [32, 1], strides = [1, 1]} : vector<32x2xf32> to vector<32x1xf32>
    %199 = vector.broadcast %198 : vector<32x1xf32> to vector<32x256xf32>
    %200 = arith.mulf %199, %197 : vector<32x256xf32>
    %cst_28 = arith.constant dense<0.000000e+00> : vector<256xf32>
    %201 = vector.multi_reduction <add>, %200, %cst_28 [0] : vector<32x256xf32> to vector<256xf32>
    %202 = vector.shape_cast %201 : vector<256xf32> to vector<1x256xf32>
    %203 = vector.extract_strided_slice %3 {offsets = [0, 0], sizes = [1, 1], strides = [1, 1]} : vector<2x1xf32> to vector<1x1xf32>
    %204 = vector.broadcast %203 : vector<1x1xf32> to vector<1x256xf32>
    %205 = arith.addf %202, %204 : vector<1x256xf32>
    %206 = math.tanh %205 : vector<1x256xf32>
    %c0_29 = arith.constant 0 : index
    %207 = arith.index_cast %167 : i32 to index
    %208 = vector.load %arg6[%c0_29, %207] : memref<2x1024xf32, #tpu.memory_space<vmem>>, vector<1x256xf32>
    tpu.vector_store %arg6[%c0_29, %207], %206 {strides = array<i32>} : memref<2x1024xf32, #tpu.memory_space<vmem>>, vector<1x256xf32>,
    %209 = vector.extract_strided_slice %2 {offsets = [0, 1], sizes = [32, 1], strides = [1, 1]} : vector<32x2xf32> to vector<32x1xf32>
    %210 = vector.broadcast %209 : vector<32x1xf32> to vector<32x256xf32>
    %211 = arith.mulf %210, %197 : vector<32x256xf32>
    %cst_30 = arith.constant dense<0.000000e+00> : vector<256xf32>
    %212 = vector.multi_reduction <add>, %211, %cst_30 [0] : vector<32x256xf32> to vector<256xf32>
    %213 = vector.shape_cast %212 : vector<256xf32> to vector<1x256xf32>
    %214 = vector.extract_strided_slice %3 {offsets = [1, 0], sizes = [1, 1], strides = [1, 1]} : vector<2x1xf32> to vector<1x1xf32>
    %215 = vector.broadcast %214 : vector<1x1xf32> to vector<1x256xf32>
    %216 = arith.addf %213, %215 : vector<1x256xf32>
    %217 = math.tanh %216 : vector<1x256xf32>
    %c1_31 = arith.constant 1 : index
    %218 = arith.index_cast %167 : i32 to index
    %219 = vector.load %arg6[%c1_31, %218] : memref<2x1024xf32, #tpu.memory_space<vmem>>, vector<1x256xf32>
    tpu.vector_store %arg6[%c1_31, %218], %217 {strides = array<i32>} : memref<2x1024xf32, #tpu.memory_space<vmem>>, vector<1x256xf32>,
    %c4_i32 = arith.constant 4 : i32
    return
  }
  func.func @transform_0(%arg0: i32) -> (i32, i32) {
    %c0_i32 = arith.constant 0 : i32
    %c0_i32_0 = arith.constant 0 : i32
    return %c0_i32, %arg0 : i32, i32
  }
  func.func @transform_1(%arg0: i32) -> (i32, i32) {
    %c0_i32 = arith.constant 0 : i32
    %c0_i32_0 = arith.constant 0 : i32
    %c0_i32_1 = arith.constant 0 : i32
    return %c0_i32, %c0_i32_0 : i32, i32
  }
  func.func @transform_2(%arg0: i32) -> (i32, i32) {
    %c0_i32 = arith.constant 0 : i32
    %c0_i32_0 = arith.constant 0 : i32
    %c0_i32_1 = arith.constant 0 : i32
    return %c0_i32, %c0_i32_0 : i32, i32
  }
  func.func @transform_3(%arg0: i32) -> (i32, i32) {
    %c0_i32 = arith.constant 0 : i32
    %c0_i32_0 = arith.constant 0 : i32
    %c0_i32_1 = arith.constant 0 : i32
    return %c0_i32, %c0_i32_0 : i32, i32
  }
  func.func @transform_4(%arg0: i32) -> (i32, i32) {
    %c0_i32 = arith.constant 0 : i32
    %c0_i32_0 = arith.constant 0 : i32
    %c0_i32_1 = arith.constant 0 : i32
    return %c0_i32, %c0_i32_0 : i32, i32
  }
  func.func @transform_5(%arg0: i32) -> (i32, i32) {
    %c0_i32 = arith.constant 0 : i32
    %c0_i32_0 = arith.constant 0 : i32
    return %c0_i32, %arg0 : i32, i32
  }
}

</mosaic_0001>

<bundles_post_ra>
// kernel: tpu_custom_call.1
= control target key start
LH: loop header
LB: loop body
LE: loop exit
PB: predicated region body
PF: predicated region fallthrough
CT: control target
= control target key end

     0   :  { %10 = vsyncpa [#allocation3], 0  ;;  %s2696_s0 = inlined_call_operand.vmem [shape: f32[4,2048], index: 0, kind: input, shape index: {}]   ;;  %s2697_s1 = inlined_call_operand.vmem [shape: f32[32,4], index: 1, kind: input, shape index: {}]   ;;  %s2698_s2 = inlined_call_operand.vmem [shape: f32[32,1], index: 2, kind: input, shape index: {}]   ;;  %s2699_s3 = inlined_call_operand.vmem [shape: f32[32,2], index: 3, kind: input, shape index: {}]   ;;  %s2700_s4 = inlined_call_operand.vmem [shape: f32[2,1], index: 4, kind: input, shape index: {}]   ;;  %s2701_s5 = inlined_call_operand.hbm [shape: f32[2,2048], index: 5, kind: output, shape index: {}]  }
   0x1   :  { %12 = vsyncpa [#allocation3 + $0x1], 0  ;;  %s1687_s18 = smov 0   ;;  %s1689_s19 = smov 0  }
   0x2   :  { %s1691_s20 = smov 0   ;;  %s1693_s21 = smov 0  }
   0x3 LB: > { %s1708_s22 = sadd.s32 4294967295, %s1649_s21   ;;  %s1471_s23 = sadd.s32 4294967294, %s1649_s21   ;;  %s1649_s21 = sphi %s1693_s21, %s2888_s21   ;;  %s1645_s20 = sphi %s1691_s20, %s2887_s20   ;;  %s1641_s19 = sphi %s1689_s19, %s2886_s19   ;;  %s1637_s18 = sphi %s1687_s18, %s2885_s18  }
   0x4   : > { %s1712_s24 = sadd.s32 1, %s1649_s21   ;;  %s135_s25 = sadd.s32 1, %s1645_s20 }
   0x5   : > { %s132_s26 = ssub.s32 %s1649_s21, %s1712_s24  ;;  %p145_p0 = scmp.ne.s32.totalorder %s1645_s20, %s1641_s19 }
   0x6   : > { %p133_p1 = scmp.eq.s32.totalorder %s132_s26, 0  ;;  %p146_p2 = scmp.eq.s32.totalorder %s1708_s22, 1 }
   0x7   : > { %p151_p3 = scmp.ne.s32.totalorder %s1641_s19, %s1637_s18  ;;  %p152_p4 = scmp.eq.s32.totalorder %s1471_s23, 1 }
   0x8   : > { %s1723_s27 = scalar_select %p133_p1, %s1645_s20, %s135_s25  }
   0x9   : > { %p1725_p5 = por %p146_p2, %p145_p0  ;;  %p1729_p6 = por %p152_p4, %p151_p3 }
   0xa   : > { %p1474_p7 = scmp.ge.s32.totalorder %s1649_s21, 1  ;;  %p191_p8 = scmp.lt.s32.totalorder %s1649_s21, 3 }
   0xc   : > { %p192_p9 = pnand %p1474_p7, %p191_p8 }
   0xe   : > { %195 = sbr.rel (%p192_p9) target bundleno = 338 (0x152), region = 40 }
  0x15   : > { %v226_v0 = vld [vmem:[%s2697_s1] sm:$0xff]  ;;  %v1651_v1 = vmov 2   ;;  %v1652_v2 = vmov 1   ;;  %v227_v3 = vld [vmem:[%s2697_s1 + $0x8] sm:$0xff]  ;;  %v229_v4 = vld [vmem:[%s2697_s1 + $0x18] sm:$0xff]  ;;  %v1653_v6 = vmov 3   ;;  %v2702_v17 = vlaneseq }
  0x16   : > { %1539 = vset.pattern.permute.xlu0 %v1651_v1  ;;  %1538 = vset.pattern.permute.xlu1 %v1652_v2  ;;  %v228_v5 = vld [vmem:[%s2697_s1 + $0x10] sm:$0xff]  ;;  %v1654_v7 = vmov 0   ;;  %v231_v8 = vld [vmem:[%s2698_s2 + $0x8] sm:$0xff]  ;;  %v234_v10 = vld [vmem:[%s2699_s3] sm:$0xff]  ;;  %s1476_s15 = sshll.u32 %s1708_s22, 3  ;;  %s216_s26 = sand.u32 1, %s1641_s19  }
  0x17   : > { %338 = vperm.xlu0 %1539, %v226_v0   ;;  %288 = vperm.xlu1 %1538, %v226_v0   ;;  %v235_v9 = vld [vmem:[%s2699_s3 + $0x8] sm:$0xff]  ;;  %v230_v11 = vld [vmem:[%s2698_s2] sm:$0xff]  ;;  %v237_v12 = vld [vmem:[%s2699_s3 + $0x18] sm:$0xff]  ;;  %p220_p10 = scmp.lt.s32.totalorder %s1476_s15, 15  ;;  %v1776_v18 = vshrl.u32 %v2702_v17, 7  ;;  %s1475_s30 = sshll.u32 %s216_s26, 4 }
  0x18   : > { %v232_v13 = vld [vmem:[%s2698_s2 + $0x10] sm:$0xff]  ;;  %v233_v14 = vld [vmem:[%s2698_s2 + $0x18] sm:$0xff]  ;;  %v238_v16 = vld [vmem:[%s2700_s4] sm:$0x3]  ;;  %s2621_s6 = scalar_lea.vmem [#allocation2], %s1475_s30  ;;  %s1493_s7 = sshll.u32 %s1708_s22, 8 }
  0x19   : > { %v236_v15 = vld [vmem:[%s2699_s3 + $0x10] sm:$0xff]  ;;  %s2890_s15 = smov (!%p220_p10, %s1476_s15), 15  ;;  %2722 = vst [vmem:[#allocation5_spill] sm:$0xff] %v1776_v18  ;;  %v305_v19 = vsub.s32 1, %v1776_v18  ;;  %v309_v20 = vsub.s32 5, %v1776_v18  ;;  %v355_v29 = vsub.s32 2, %v1776_v18  ;;  %s2649_s11 = scalar_lea.hbm %s2701_s5, %s1493_s7 }
  0x1a   : > { %s1477_s16 = sshll.u32 %s2890_s15, 2  ;;  %v359_v30 = vsub.s32 6, %v1776_v18  ;;  %v405_v47 = vsub.s32 3, %v1776_v18  ;;  %v409_v48 = vsub.s32 7, %v1776_v18  ;;  %v263_v55 = vsub.s32 0, %v1776_v18  ;;  %s1409_s8 = sshll.u32 %s2621_s6, 4  ;;  %s2651_s8 = int_to_ptr.vmem [resolvable:$true] %s1409_s8 }
  0x1b   : > { %1542 = vset.pattern.permute.xlu0 %v1652_v2  ;;  %292 = vperm.xlu1 %1538, %v227_v3   ;;  %s223_s25 = scalar_lea.vmem %s2696_s0, %s1477_s16  ;;  %v267_v56 = vsub.s32 4, %v1776_v18  ;;  %s1395_s22 = scalar_lea.sflag [#allocation3], %s216_s26 }
  0x1c   : > { %300 = vperm.xlu0 %1542, %v229_v4   ;;  %v1783_v21 = vld [vmem:[%s223_s25] sm:$0xff]  ;;  %v1785_v22 = vld [vmem:[%s223_s25 + $0x8] sm:$0xff]  ;;  %v1789_v25 = vld [vmem:[%s223_s25 + $0x10] sm:$0xff]  ;;  %s1587_s12 = scalar_lea.vmem %s2651_s8, 256  ;;  %s1656_s13 = smov [#allocation2]  }
  0x1d   : > { %v306_v23 = vrot.slane %v1783_v21, %v305_v19  ;;  %v310_v24 = vrot.slane %v1783_v21, %v309_v20  ;;  %v658_v26 = vrot.slane %v1785_v22, %v305_v19  ;;  %v662_v27 = vrot.slane %v1785_v22, %v309_v20  ;;  %v1793_v28 = vld [vmem:[%s223_s25 + $0x18] sm:$0xff]  ;;  %p1588_p11 = scmp.ne.s32.totalorder %s2651_s8, %s1587_s12  ;;  %s1591_s14 = sshll.u32 %s1656_s13, 4  ;;  %s1592_s14 = int_to_ptr.vmem [resolvable:$false] %s1591_s14 }
  0x1e   : > { %v914_v31 = vrot.slane %v1789_v25, %v305_v19  ;;  %v918_v32 = vrot.slane %v1789_v25, %v309_v20  ;;  %v1170_v35 = vrot.slane %v1793_v28, %v305_v19  ;;  %v1174_v36 = vrot.slane %v1793_v28, %v309_v20  ;;  %s1593_s15 = scalar_lea.vmem %s1592_s14, 512  ;;  %p1594_p0 = scmp.lt.s32.totalorder %s2651_s8, %s1592_s14 }
  0x1f   : > { %296 = vperm.xlu1 %1538, %v228_v5   ;;  %v1799_v33 = vrot.slane %v306_v23, %v305_v19  ;;  %v1801_v34 = vrot.slane %v310_v24, %v305_v19  ;;  %v1805_v37 = vrot.slane %v658_v26, %v305_v19  ;;  %v1807_v38 = vrot.slane %v662_v27, %v305_v19  ;;  %p1589_p12 = pnand %p1588_p11, %p1725_p5  ;;  %p1595_p1 = scmp.lt.s32.totalorder %s1593_s15, %s1587_s12 }
  0x20   : > { %1545 = vset.pattern.permute.xlu0 %v1653_v6  ;;  %v356_v39 = vrot.slane %v1783_v21, %v355_v29  ;;  %v360_v40 = vrot.slane %v1783_v21, %v359_v30  ;;  %v692_v41 = vrot.slane %v1785_v22, %v355_v29  ;;  %v696_v42 = vrot.slane %v1785_v22, %v359_v30 }
  0x21   : > { %392 = vperm.xlu0 %1545, %v227_v3   ;;  %v948_v43 = vrot.slane %v1789_v25, %v355_v29  ;;  %v952_v44 = vrot.slane %v1789_v25, %v359_v30  ;;  %v1204_v45 = vrot.slane %v1793_v28, %v355_v29  ;;  %v1208_v46 = vrot.slane %v1793_v28, %v359_v30  ;;  %p1590_p13 = pneg %p1589_p12  ;;  %p1596_p2 = por %p1595_p1, %p1594_p0 }
  0x22   : > { %v1819_v49 = vrot.slane %v914_v31, %v305_v19  ;;  %v1821_v50 = vrot.slane %v918_v32, %v305_v19  ;;  %v1823_v51 = vrot.slane %v1170_v35, %v305_v19  ;;  %v1825_v52 = vrot.slane %v1174_v36, %v305_v19 }
  0x23   : > { %1540 = vset.pattern.permute.xlu1 %v1651_v1  ;;  %v1827_v53 = vrot.slane %v356_v39, %v355_v29  ;;  %v1829_v54 = vrot.slane %v360_v40, %v355_v29  ;;  %v1833_v57 = vrot.slane %v692_v41, %v355_v29  ;;  %v1835_v58 = vrot.slane %v696_v42, %v355_v29  ;;  %p1597_p3 = pnand %p1596_p2, %p1590_p13 }
  0x24   : > { %342 = vperm.xlu1 %1540, %v227_v3   ;;  %v1837_v59 = vrot.slane %v948_v43, %v355_v29  ;;  %v1839_v60 = vrot.slane %v952_v44, %v355_v29  ;;  %v1841_v61 = vrot.slane %v1204_v45, %v355_v29  ;;  %v1843_v62 = vrot.slane %v1208_v46, %v355_v29 }
  0x25   : > { %400 = vperm.xlu0 %1545, %v229_v4   ;;  %v406_v63 = vrot.slane %v1783_v21, %v405_v47  ;;  %v1144_v19 = vrot.slane %v1793_v28, %v263_v55  ;;  %v1148_v20 = vrot.slane %v1793_v28, %v267_v56 }
  0x27   : > { %v1895_v41 = vrot.slane %v1144_v19, %v263_v55  ;;  %v1897_v42 = vrot.slane %v1148_v20, %v263_v55 }
  0x28   : > { %1541 = vset.pattern.permute.xlu1 %v1654_v7 }
  0x29   : > { %1548 = vset.pattern.permute.xlu0 %v1654_v7  ;;  %257 = vperm.xlu1 %1541, %v229_v4  }
  0x2a   : > { %242 = vperm.xlu0 %1548, %v226_v0  }
  0x2d   : > { %1543 = vset.pattern.permute.xlu1 %v1651_v1 }
  0x2e   : > { %247 = vperm.xlu0 %1548, %v227_v3   ;;  %346 = vperm.xlu1 %1543, %v228_v5   ;;  %v982_v3 = vrot.slane %v1789_v25, %v405_v47 }
  0x30   : > { %v1869_v24 = vrot.slane %v982_v3, %v405_v47 }
  0x32   : > { %252 = vperm.xlu0 %1548, %v228_v5   ;;  %1544 = vset.pattern.permute.xlu1 %v1653_v6  ;;  %2726 = vst [vmem:[#allocation9_spill] sm:$0xff] %v1869_v24 }
  0x33   : > { %388 = vperm.xlu1 %1544, %v226_v0   ;;  %v410_v0 = vrot.slane %v1783_v21, %v409_v48 }
  0x36   : > { %444 = vperm.xlu0 %1548, %v231_v8   ;;  %v268_v8 = vrot.slane %v1783_v21, %v267_v56 }
  0x37   : > { %1546 = vset.pattern.permute.xlu1 %v1651_v1  ;;  %v726_v1 = vrot.slane %v1785_v22, %v405_v47 }
  0x38   : > { %350 = vperm.xlu1 %1546, %v229_v4   ;;  %v986_v4 = vrot.slane %v1789_v25, %v409_v48  ;;  %v1879_v29 = vrot.slane %v268_v8, %v263_v55 }
  0x39   : > { %v1865_v23 = vrot.slane %v726_v1, %v405_v47 }
  0x3a   : > { %488 = vperm.xlu0 %1548, %v235_v9   ;;  %v1871_v26 = vrot.slane %v986_v4, %v405_v47 }
  0x3b   : > { %2725 = vst [vmem:[#allocation8_spill] sm:$0xff] %v1865_v23 }
  0x3c   : > { %1547 = vset.pattern.permute.xlu1 %v1653_v6  ;;  %v1242_v6 = vrot.slane %v1793_v28, %v409_v48 }
  0x3d   : > { %396 = vperm.xlu1 %1547, %v228_v5   ;;  %v1238_v5 = vrot.slane %v1793_v28, %v405_v47 }
  0x3e   : > { %1552 = vset.pattern.permute.xlu0 %v1652_v2  ;;  %v1875_v27 = vrot.slane %v1242_v6, %v405_v47 }
  0x3f   : > { %560 = vperm.xlu0 %1552, %v234_v10  }
  0x40   : > { %2728 = vst [vmem:[#allocation11_spill] sm:$0xff] %v1875_v27 }
  0x41   : > { %1549 = vset.pattern.permute.xlu1 %v1654_v7 }
  0x42   : > { %439 = vperm.xlu1 %1549, %v230_v11   ;;  %v632_v11 = vrot.slane %v1785_v22, %v263_v55 }
  0x43   : > { %572 = vperm.xlu0 %1552, %v237_v12  }
  0x44   : > { %v1881_v31 = vrot.slane %v632_v11, %v263_v55 }
  0x46   : > { %449 = vperm.xlu1 %1549, %v232_v13   ;;  %v888_v13 = vrot.slane %v1789_v25, %v263_v55 }
  0x48   : > { %v1885_v32 = vrot.slane %v888_v13, %v263_v55 }
  0x4a   : > { %454 = vperm.xlu1 %1549, %v233_v14   ;;  %v892_v14 = vrot.slane %v1789_v25, %v267_v56 }
  0x4c   : > { %v1887_v35 = vrot.slane %v892_v14, %v263_v55 }
  0x4e   : > { %1550 = vset.pattern.permute.xlu1 %v1652_v2 }
  0x4f   : > { %564 = vperm.xlu1 %1550, %v235_v9  }
  0x53   : > { %1551 = vset.pattern.permute.xlu1 %v1654_v7 }
  0x54   : > { %483 = vperm.xlu1 %1551, %v234_v10  }
  0x58   : > { %1553 = vset.pattern.permute.xlu1 %v1652_v2  ;;  %v730_v2 = vrot.slane %v1785_v22, %v409_v48 }
  0x59   : > { %568 = vperm.xlu1 %1553, %v236_v15  }
  0x5d   : > { %1554 = vset.pattern.permute.xlu1 %v1654_v7  ;;  %v264_v7 = vrot.slane %v1783_v21, %v263_v55  ;;  %v1867_v21 = vrot.slane %v730_v2, %v405_v47 }
  0x5e   : > { %493 = vperm.xlu1 %1554, %v236_v15   ;;  %v1859_v15 = vrot.slane %v406_v63, %v405_v47 }
  0x5f   : > { %v1877_v25 = vrot.slane %v264_v7, %v263_v55 }
  0x60   : > { %2723 = vst [vmem:[#allocation6_spill] sm:$0xff] %v1859_v15 }
  0x62   : > { %498 = vperm.xlu1 %1554, %v237_v12   ;;  %v636_v12 = vrot.slane %v1785_v22, %v267_v56  ;;  %v1873_v22 = vrot.slane %v1238_v5, %v405_v47 }
  0x64   : > { %2727 = vst [vmem:[#allocation10_spill] sm:$0xff] %v1873_v22  ;;  %v1883_v28 = vrot.slane %v636_v12, %v263_v55 }
  0x66   : > { %529 = vperm.xlu1 %1554, %v238_v16   ;;  %v1861_v16 = vrot.slane %v410_v0, %v405_v47 }
  0x68   : > { %2724 = vst [vmem:[#allocation7_spill] sm:$0xff] %v1861_v16 }
  0x96   : > { %v289_v9 = vpop.permute.xlu1 %288  ;;  %v339_v10 = vpop.permute.xlu0 %338 }
  0x97   : > { %v1890_v36 = vmul.f32 %v1799_v33, %v289_v9  ;;  %v1893_v39 = vmul.f32 %v1801_v34, %v289_v9  ;;  %v1900_v43 = vmul.f32 %v1805_v37, %v289_v9  ;;  %v1903_v44 = vmul.f32 %v1807_v38, %v289_v9 }
  0x98   : > { %v1906_v45 = vmul.f32 %v1819_v49, %v289_v9  ;;  %v1909_v46 = vmul.f32 %v1821_v50, %v289_v9  ;;  %v1912_v47 = vmul.f32 %v1823_v51, %v289_v9  ;;  %v1915_v48 = vmul.f32 %v1825_v52, %v289_v9 }
  0x99   : > { %v1918_v55 = vmul.f32 %v1827_v53, %v339_v10  ;;  %v1921_v56 = vmul.f32 %v1829_v54, %v339_v10  ;;  %v1924_v63 = vmul.f32 %v1833_v57, %v339_v10  ;;  %v1927_v0 = vmul.f32 %v1835_v58, %v339_v10 }
  0x9a   : > { %v293_v30 = vpop.permute.xlu1 %292  ;;  %v1930_v1 = vmul.f32 %v1837_v59, %v339_v10  ;;  %v1933_v2 = vmul.f32 %v1839_v60, %v339_v10  ;;  %v1936_v4 = vmul.f32 %v1841_v61, %v339_v10  ;;  %v1939_v5 = vmul.f32 %v1843_v62, %v339_v10 }
  0x9b   : > { %v301_v40 = vpop.permute.xlu0 %300  ;;  %2729 = vst [vmem:[#allocation12_spill] sm:$0xff] %v1918_v55  ;;  %2730 = vst [vmem:[#allocation13_spill] sm:$0xff] %v1921_v56  ;;  %v1942_v6 = vmul.f32 %v1799_v33, %v293_v30  ;;  %v1945_v7 = vmul.f32 %v1801_v34, %v293_v30  ;;  %v1948_v8 = vmul.f32 %v1805_v37, %v293_v30 }
  0x9c   : > { %2731 = vst [vmem:[#allocation14_spill] sm:$0xff] %v1924_v63  ;;  %2732 = vst [vmem:[#allocation15_spill] sm:$0xff] %v1927_v0  ;;  %v1951_v9 = vmul.f32 %v1807_v38, %v293_v30  ;;  %v1954_v11 = vmul.f32 %v1819_v49, %v293_v30  ;;  %v1957_v12 = vmul.f32 %v1821_v50, %v293_v30 }
  0x9d   : > { %2733 = vst [vmem:[#allocation16_spill] sm:$0xff] %v1930_v1  ;;  %2734 = vst [vmem:[#allocation17_spill] sm:$0xff] %v1933_v2  ;;  %v1960_v13 = vmul.f32 %v1823_v51, %v293_v30  ;;  %v1963_v14 = vmul.f32 %v1825_v52, %v293_v30  ;;  %v327_v19 = vmul.f32 %v1799_v33, %v301_v40 }
  0x9e   : > { %v297_v3 = vpop.permute.xlu1 %296  ;;  %2735 = vst [vmem:[#allocation18_spill] sm:$0xff] %v1936_v4  ;;  %2736 = vst [vmem:[#allocation19_spill] sm:$0xff] %v1939_v5  ;;  %v328_v20 = vmul.f32 %v1801_v34, %v301_v40  ;;  %v679_v17 = vmul.f32 %v1805_v37, %v301_v40  ;;  %v680_v18 = vmul.f32 %v1807_v38, %v301_v40 }
  0x9f   : > { %2737 = vst [vmem:[#allocation20_spill] sm:$0xff] %v1960_v13  ;;  %2738 = vst [vmem:[#allocation21_spill] sm:$0xff] %v1963_v14  ;;  %v935_v5 = vmul.f32 %v1819_v49, %v301_v40  ;;  %v936_v4 = vmul.f32 %v1821_v50, %v301_v40  ;;  %v1191_v2 = vmul.f32 %v1823_v51, %v301_v40 }
  0xa0   : > { %v393_v10 = vpop.permute.xlu0 %392  ;;  %v1192_v1 = vmul.f32 %v1825_v52, %v301_v40  ;;  %v1974_v0 = vmul.f32 %v1799_v33, %v297_v3  ;;  %v1977_v30 = vmul.f32 %v1801_v34, %v297_v3  ;;  %v1980_v56 = vmul.f32 %v1805_v37, %v297_v3 }
  0xa1   : > { %v1983_v55 = vmul.f32 %v1807_v38, %v297_v3  ;;  %v1986_v14 = vmul.f32 %v1819_v49, %v297_v3  ;;  %v1989_v13 = vmul.f32 %v1821_v50, %v297_v3  ;;  %v1992_v33 = vmul.f32 %v1823_v51, %v297_v3 }
  0xa2   : > { %2739 = vst [vmem:[#allocation22_spill] sm:$0xff] %v1977_v30  ;;  %v1995_v34 = vmul.f32 %v1825_v52, %v297_v3  ;;  %v1998_v30 = vmul.f32 %v1859_v15, %v393_v10  ;;  %v2001_v37 = vmul.f32 %v1861_v16, %v393_v10  ;;  %v2004_v38 = vmul.f32 %v1865_v23, %v393_v10 }
  0xa3   : > { %v343_v63 = vpop.permute.xlu1 %342  ;;  %2740 = vst [vmem:[#allocation23_spill] sm:$0xff] %v1983_v55  ;;  %2741 = vst [vmem:[#allocation24_spill] sm:$0xff] %v1986_v14  ;;  %v2007_v49 = vmul.f32 %v1867_v21, %v393_v10  ;;  %v2010_v50 = vmul.f32 %v1869_v24, %v393_v10  ;;  %v2013_v51 = vmul.f32 %v1871_v26, %v393_v10 }
  0xa4   : > { %2742 = vst [vmem:[#allocation25_spill] sm:$0xff] %v1989_v13  ;;  %v401_v40 = vpop.permute.xlu0 %400  ;;  %2743 = vst [vmem:[#allocation26_spill] sm:$0xff] %v1992_v33  ;;  %v2016_v52 = vmul.f32 %v1873_v22, %v393_v10  ;;  %v2019_v3 = vmul.f32 %v1875_v27, %v393_v10  ;;  %v2025_v33 = vmul.f32 %v1829_v54, %v343_v63 }
  0xa5   : > { %2744 = vst [vmem:[#allocation27_spill] sm:$0xff] %v1995_v34  ;;  %2745 = vst [vmem:[#allocation28_spill] sm:$0xff] %v1998_v30  ;;  %v2022_v34 = vmul.f32 %v1827_v53, %v343_v63  ;;  %v2028_v13 = vmul.f32 %v1833_v57, %v343_v63  ;;  %v2040_v10 = vmul.f32 %v1841_v61, %v343_v63 }
  0xa6   : > { %2746 = vst [vmem:[#allocation29_spill] sm:$0xff] %v2001_v37  ;;  %2747 = vst [vmem:[#allocation30_spill] sm:$0xff] %v2004_v38  ;;  %v2072_v55 = vmul.f32 %v1873_v22, %v401_v40 }
  0xa7   : > { %2748 = vst [vmem:[#allocation31_spill] sm:$0xff] %v2007_v49  ;;  %2749 = vst [vmem:[#allocation32_spill] sm:$0xff] %v2010_v50  ;;  %v2031_v50 = vmul.f32 %v1835_v58, %v343_v63  ;;  %v2046_v49 = vmul.f32 %v1859_v15, %v401_v40  ;;  %v2057_v15 = vmul.f32 %v1861_v16, %v401_v40  ;;  %v1655_v16 = vmov 1966171168  }
  0xa8   : > { %2750 = vst [vmem:[#allocation33_spill] sm:$0xff] %v2013_v51  ;;  %2751 = vst [vmem:[#allocation34_spill] sm:$0xff] %v2016_v52  ;;  %v2034_v51 = vmul.f32 %v1837_v59, %v343_v63  ;;  %v258_v14 = vpop.permute.xlu1 %257  ;;  %v2037_v52 = vmul.f32 %v1839_v60, %v343_v63 }
  0xa9   : > { %2752 = vst [vmem:[#allocation35_spill] sm:$0xff] %v2019_v3  ;;  %2753 = vst [vmem:[#allocation36_spill] sm:$0xff] %v2022_v34  ;;  %v2043_v3 = vmul.f32 %v1843_v62, %v343_v63  ;;  %v243_v38 = vpop.permute.xlu0 %242  ;;  %v285_v37 = vmul.f32 %v1877_v25, %v258_v14  ;;  %v286_v30 = vmul.f32 %v1879_v29, %v258_v14 }
  0xaa   : > { %2754 = vst [vmem:[#allocation37_spill] sm:$0xff] %v2025_v33  ;;  %2755 = vst [vmem:[#allocation38_spill] sm:$0xff] %v2028_v13  ;;  %v910_v13 = vmul.f32 %v1887_v35, %v258_v14  ;;  %v1166_v63 = vmul.f32 %v1897_v42, %v258_v14  ;;  %v2066_v33 = vmul.f32 %v1869_v24, %v401_v40 }
  0xab   : > { %2756 = vst [vmem:[#allocation39_spill] sm:$0xff] %v2031_v50  ;;  %2757 = vst [vmem:[#allocation40_spill] sm:$0xff] %v2034_v51  ;;  %v653_v51 = vmul.f32 %v1881_v31, %v258_v14  ;;  %v654_v50 = vmul.f32 %v1883_v28, %v258_v14  ;;  %v2069_v34 = vmul.f32 %v1871_v26, %v401_v40 }
  0xac   : > { %2758 = vst [vmem:[#allocation41_spill] sm:$0xff] %v2037_v52  ;;  %2759 = vst [vmem:[#allocation42_spill] sm:$0xff] %v2040_v10  ;;  %v909_v52 = vmul.f32 %v1885_v32, %v258_v14  ;;  %v1165_v10 = vmul.f32 %v1895_v41, %v258_v14  ;;  %v2075_v14 = vmul.f32 %v1875_v27, %v401_v40 }
  0xad   : > { %2760 = vst [vmem:[#allocation43_spill] sm:$0xff] %v2043_v3  ;;  %2761 = vst [vmem:[#allocation44_spill] sm:$0xff] %v2046_v49  ;;  %v2060_v49 = vmul.f32 %v1865_v23, %v401_v40  ;;  %v2063_v3 = vmul.f32 %v1867_v21, %v401_v40  ;;  %v2079_v23 = vadd.f32 %v327_v19, %v285_v37  ;;  %v248_v40 = vpop.permute.xlu0 %247 }
  0xae   : > { %2762 = vst [vmem:[#allocation45_spill] sm:$0xff] %v2057_v15  ;;  %2765 = vst [vmem:[#allocation48_spill] sm:$0xff] %v2066_v33  ;;  %v2077_v15 = vunpack.c.l.s4 %v1655_v16  ;;  %v2085_v24 = vadd.f32 %v680_v18, %v654_v50  ;;  %v2087_v33 = vadd.f32 %v935_v5, %v909_v52  ;;  %v2091_v22 = vadd.f32 %v1191_v2, %v1165_v10 }
  0xaf   : > { %2763 = vst [vmem:[#allocation46_spill] sm:$0xff] %v2060_v49  ;;  %2764 = vst [vmem:[#allocation47_spill] sm:$0xff] %v2063_v3  ;;  %v2081_v49 = vadd.f32 %v328_v20, %v286_v30  ;;  %v2083_v3 = vadd.f32 %v679_v17, %v653_v51  ;;  %v279_v16 = vmul.f32 %v1877_v25, %v243_v38 }
  0xb0   : > { %2766 = vst [vmem:[#allocation49_spill] sm:$0xff] %v2069_v34  ;;  %2767 = vst [vmem:[#allocation50_spill] sm:$0xff] %v2072_v55  ;;  %v2089_v34 = vadd.f32 %v936_v4, %v910_v13  ;;  %v2093_v55 = vadd.f32 %v1192_v1, %v1166_v63  ;;  %v280_v19 = vmul.f32 %v1879_v29, %v243_v38 }
  0xb1   : > { %2768 = vst [vmem:[#allocation51_spill] sm:$0xff] %v2075_v14  ;;  %2769 = vst [vmem:[#allocation52_spill] sm:$0xff] %v2077_v15  ;;  %v647_v20 = vmul.f32 %v1881_v31, %v243_v38  ;;  %v648_v17 = vmul.f32 %v1883_v28, %v243_v38  ;;  %v903_v18 = vmul.f32 %v1885_v32, %v243_v38 }
  0xb2   : > { %2770 = vst [vmem:[#allocation53_spill] sm:$0xff] %v2091_v22  ;;  %2771 = vst [vmem:[#allocation54_spill] sm:$0xff] %v2093_v55  ;;  %v904_v5 = vmul.f32 %v1887_v35, %v243_v38  ;;  %v1159_v4 = vmul.f32 %v1895_v41, %v243_v38  ;;  %v1160_v2 = vmul.f32 %v1897_v42, %v243_v38 }
  0xb3   : > { %v281_v1 = vmul.f32 %v1877_v25, %v248_v40  ;;  %v282_v13 = vmul.f32 %v1879_v29, %v248_v40  ;;  %v649_v30 = vmul.f32 %v1881_v31, %v248_v40  ;;  %v650_v37 = vmul.f32 %v1883_v28, %v248_v40 }
  0xb4   : > { %v905_v50 = vmul.f32 %v1885_v32, %v248_v40  ;;  %v906_v51 = vmul.f32 %v1887_v35, %v248_v40  ;;  %v1161_v52 = vmul.f32 %v1895_v41, %v248_v40  ;;  %v1162_v10 = vmul.f32 %v1897_v42, %v248_v40 }
  0xb5   : > { %v2112_v63 = vadd.f32 %v1890_v36, %v279_v16  ;;  %v2115_v38 = vadd.f32 %v1893_v39, %v280_v19  ;;  %v2118_v15 = vadd.f32 %v1900_v43, %v647_v20  ;;  %v2121_v14 = vadd.f32 %v1903_v44, %v648_v17  ;;  %v253_v39 = vpop.permute.xlu0 %252  ;;  %v2772_v17 = vld [vmem:[#allocation20_spill] sm:$0xff] }
  0xb6   : > { %v2124_v55 = vadd.f32 %v1906_v45, %v903_v18  ;;  %v2127_v22 = vadd.f32 %v1909_v46, %v904_v5  ;;  %v2130_v40 = vadd.f32 %v1912_v47, %v1159_v4  ;;  %v2133_v36 = vadd.f32 %v1915_v48, %v1160_v2  ;;  %v347_v45 = vpop.permute.xlu1 %346  ;;  %v2773_v18 = vld [vmem:[#allocation21_spill] sm:$0xff] }
  0xb7   : > { %v331_v16 = vadd.f32 %v1942_v6, %v281_v1  ;;  %v332_v43 = vadd.f32 %v1945_v7, %v282_v13  ;;  %v683_v44 = vadd.f32 %v1948_v8, %v649_v30  ;;  %v684_v19 = vadd.f32 %v1951_v9, %v650_v37 }
  0xb8   : > { %v939_v20 = vadd.f32 %v1954_v11, %v905_v50  ;;  %v940_v46 = vadd.f32 %v1957_v12, %v906_v51  ;;  %v1195_v47 = vadd.f32 %v2772_v17, %v1161_v52  ;;  %v1196_v5 = vadd.f32 %v2773_v18, %v1162_v10  ;;  %v2783_v50 = vld [vmem:[#allocation22_spill] sm:$0xff]  ;;  %v2786_v10 = vld [vmem:[#allocation23_spill] sm:$0xff] }
  0xb9   : > { %v283_v48 = vmul.f32 %v1877_v25, %v253_v39  ;;  %v284_v4 = vmul.f32 %v1879_v29, %v253_v39  ;;  %v651_v6 = vmul.f32 %v1881_v31, %v253_v39  ;;  %v652_v7 = vmul.f32 %v1883_v28, %v253_v39 }
  0xba   : > { %v2148_v8 = vmul.f32 %v1827_v53, %v347_v45  ;;  %v2151_v9 = vmul.f32 %v1829_v54, %v347_v45  ;;  %v2154_v11 = vmul.f32 %v1833_v57, %v347_v45  ;;  %v2157_v12 = vmul.f32 %v1835_v58, %v347_v45  ;;  %v389_v17 = vpop.permute.xlu1 %388 }
  0xbb   : > { %v2160_v25 = vmul.f32 %v1837_v59, %v347_v45  ;;  %v2163_v29 = vmul.f32 %v1839_v60, %v347_v45  ;;  %v2166_v31 = vmul.f32 %v1841_v61, %v347_v45  ;;  %v2169_v28 = vmul.f32 %v1843_v62, %v347_v45 }
  0xbc   : > { %2774 = vst [vmem:[#allocation20_spill] sm:$0xff] %v2148_v8  ;;  %2775 = vst [vmem:[#allocation21_spill] sm:$0xff] %v2151_v9  ;;  %v907_v2 = vmul.f32 %v1885_v32, %v253_v39  ;;  %v908_v1 = vmul.f32 %v1887_v35, %v253_v39  ;;  %v1163_v13 = vmul.f32 %v1895_v41, %v253_v39  ;;  %v2788_v32 = vld [vmem:[#allocation36_spill] sm:$0xff]  ;;  %v2789_v35 = vld [vmem:[#allocation37_spill] sm:$0xff] }
  0xbd   : > { %2776 = vst [vmem:[#allocation55_spill] sm:$0xff] %v2154_v11  ;;  %2777 = vst [vmem:[#allocation56_spill] sm:$0xff] %v2157_v12  ;;  %v1164_v30 = vmul.f32 %v1897_v42, %v253_v39  ;;  %v2176_v37 = vadd.f32 %v1974_v0, %v283_v48  ;;  %v2179_v51 = vadd.f32 %v2783_v50, %v284_v4  ;;  %v2790_v41 = vld [vmem:[#allocation38_spill] sm:$0xff]  ;;  %v2791_v42 = vld [vmem:[#allocation39_spill] sm:$0xff]  ;;  %v445_v0 = vpop.permute.xlu0 %444 }
  0xbe   : > { %2778 = vst [vmem:[#allocation57_spill] sm:$0xff] %v2160_v25  ;;  %2779 = vst [vmem:[#allocation58_spill] sm:$0xff] %v2163_v29  ;;  %v2182_v52 = vadd.f32 %v1980_v56, %v651_v6  ;;  %v2185_v45 = vadd.f32 %v2786_v10, %v652_v7  ;;  %v381_v18 = vadd.f32 %v2788_v32, %v331_v16  ;;  %v2792_v48 = vld [vmem:[#allocation40_spill] sm:$0xff]  ;;  %v2793_v4 = vld [vmem:[#allocation41_spill] sm:$0xff] }
  0xbf   : > { %2780 = vst [vmem:[#allocation59_spill] sm:$0xff] %v2166_v31  ;;  %2781 = vst [vmem:[#allocation60_spill] sm:$0xff] %v2169_v28  ;;  %v382_v28 = vadd.f32 %v2789_v35, %v332_v43  ;;  %v717_v31 = vadd.f32 %v2790_v41, %v683_v44  ;;  %v718_v39 = vadd.f32 %v2791_v42, %v684_v19  ;;  %v2794_v25 = vld [vmem:[#allocation42_spill] sm:$0xff]  ;;  %v2795_v6 = vld [vmem:[#allocation43_spill] sm:$0xff] }
  0xc0   : > { %2782 = vst [vmem:[#allocation61_spill] sm:$0xff] %v2176_v37  ;;  %2784 = vst [vmem:[#allocation22_spill] sm:$0xff] %v2179_v51  ;;  %v973_v29 = vadd.f32 %v2792_v48, %v939_v20  ;;  %v974_v50 = vadd.f32 %v2793_v4, %v940_v46  ;;  %v1229_v56 = vadd.f32 %v2794_v25, %v1195_v47  ;;  %v2796_v7 = vld [vmem:[#allocation28_spill] sm:$0xff]  ;;  %v2798_v16 = vld [vmem:[#allocation30_spill] sm:$0xff] }
  0xc1   : > { %2785 = vst [vmem:[#allocation62_spill] sm:$0xff] %v2182_v52  ;;  %2787 = vst [vmem:[#allocation23_spill] sm:$0xff] %v2185_v45  ;;  %v1230_v12 = vadd.f32 %v2795_v6, %v1196_v5  ;;  %v431_v10 = vadd.f32 %v2796_v7, %v381_v18  ;;  %v2797_v45 = vld [vmem:[#allocation29_spill] sm:$0xff]  ;;  %v751_v32 = vadd.f32 %v2798_v16, %v717_v31  ;;  %v2799_v43 = vld [vmem:[#allocation31_spill] sm:$0xff] }
  0xc2   : > { %v432_v11 = vadd.f32 %v2797_v45, %v382_v28  ;;  %v752_v35 = vadd.f32 %v2799_v43, %v718_v39  ;;  %v2800_v44 = vld [vmem:[#allocation24_spill] sm:$0xff]  ;;  %v2803_v20 = vld [vmem:[#allocation33_spill] sm:$0xff]  ;;  %v2804_v46 = vld [vmem:[#allocation34_spill] sm:$0xff] }
  0xc3   : > { %v2200_v41 = vadd.f32 %v2800_v44, %v907_v2  ;;  %v2802_v19 = vld [vmem:[#allocation32_spill] sm:$0xff]  ;;  %v1008_v48 = vadd.f32 %v2803_v20, %v974_v50  ;;  %v1263_v4 = vadd.f32 %v2804_v46, %v1229_v56  ;;  %v2805_v47 = vld [vmem:[#allocation25_spill] sm:$0xff]  ;;  %v2807_v5 = vld [vmem:[#allocation26_spill] sm:$0xff]  ;;  %v459_v31 = vadd.f32 %v445_v0, %v431_v10 }
  0xc4   : > { %v1007_v42 = vadd.f32 %v2802_v19, %v973_v29  ;;  %v2206_v25 = vadd.f32 %v2805_v47, %v908_v1  ;;  %v2209_v18 = vadd.f32 %v2807_v5, %v1163_v13  ;;  %v2809_v28 = vld [vmem:[#allocation27_spill] sm:$0xff]  ;;  %v2811_v39 = vld [vmem:[#allocation6_spill] sm:$0xff]  ;;  %v460_v2 = vadd.f32 %v445_v0, %v432_v11  ;;  %v351_v19 = vpop.permute.xlu1 %350  ;;  %v2814_v13 = vld [vmem:[#allocation8_spill] sm:$0xff] }
  0xc5   : > { %2801 = vst [vmem:[#allocation36_spill] sm:$0xff] %v2200_v41  ;;  %v2212_v45 = vadd.f32 %v2809_v28, %v1164_v30  ;;  %v2215_v6 = vmul.f32 %v2811_v39, %v389_v17  ;;  %v759_v7 = vadd.f32 %v751_v32, %v445_v0  ;;  %v2812_v29 = vld [vmem:[#allocation35_spill] sm:$0xff]  ;;  %v760_v56 = vadd.f32 %v752_v35, %v445_v0  ;;  %v2815_v46 = vld [vmem:[#allocation9_spill] sm:$0xff]  ;;  %v2816_v11 = vld [vmem:[#allocation10_spill] sm:$0xff] }
  0xc6   : > { %2806 = vst [vmem:[#allocation37_spill] sm:$0xff] %v2206_v25  ;;  %2808 = vst [vmem:[#allocation38_spill] sm:$0xff] %v2209_v18  ;;  %v1264_v16 = vadd.f32 %v2812_v29, %v1230_v12  ;;  %v2813_v50 = vld [vmem:[#allocation7_spill] sm:$0xff]  ;;  %v1015_v1 = vadd.f32 %v1007_v42, %v445_v0  ;;  %v1016_v44 = vadd.f32 %v1008_v48, %v445_v0  ;;  %v467_v35 = vmul.f32 0.01, %v459_v31 }
  0xc7   : > { %2810 = vst [vmem:[#allocation39_spill] sm:$0xff] %v2212_v45  ;;  %v2219_v43 = vmul.f32 %v2813_v50, %v389_v17  ;;  %v741_v20 = vmul.f32 %v2814_v13, %v389_v17  ;;  %v742_v30 = vmul.f32 %v1867_v21, %v389_v17  ;;  %v997_v10 = vmul.f32 %v2815_v46, %v389_v17 }
  0xc8   : > { %v1271_v47 = vadd.f32 %v1263_v4, %v445_v0  ;;  %v2225_v5 = vmul.f32 %v1871_v26, %v389_v17  ;;  %v2228_v32 = vmul.f32 %v2816_v11, %v389_v17  ;;  %v2231_v12 = vmul.f32 %v1875_v27, %v389_v17 }
  0xc9   : > { %v468_v42 = vmul.f32 0.01, %v460_v2  ;;  %v767_v48 = vmul.f32 0.01, %v759_v7  ;;  %v1272_v28 = vadd.f32 %v1264_v16, %v445_v0  ;;  %v377_v29 = vmul.f32 %v1827_v53, %v351_v19  ;;  %v397_v53 = vpop.permute.xlu1 %396 }
  0xca   : > { %v768_v45 = vmul.f32 0.01, %v760_v56  ;;  %v1023_v18 = vmul.f32 0.01, %v1015_v1  ;;  %v1024_v25 = vmul.f32 0.01, %v1016_v44  ;;  %v378_v4 = vmul.f32 %v1829_v54, %v351_v19  ;;  %v2246_v54 = vpop.permute.xlu0 %488 }
  0xcb   : > { %v1279_v41 = vmul.f32 0.01, %v1271_v47  ;;  %v713_v52 = vmul.f32 %v1833_v57, %v351_v19  ;;  %v714_v9 = vmul.f32 %v1835_v58, %v351_v19  ;;  %v969_v51 = vmul.f32 %v1837_v59, %v351_v19 }
  0xcc   : > { %v970_v17 = vmul.f32 %v1839_v60, %v351_v19  ;;  %v1225_v8 = vmul.f32 %v1841_v61, %v351_v19  ;;  %v1226_v0 = vmul.f32 %v1843_v62, %v351_v19  ;;  %v2241_v16 = vmax.f32 %v459_v31, %v467_v35  ;;  %v2827_v19 = vld [vmem:[#allocation13_spill] sm:$0xff]  ;;  %v2828_v35 = vld [vmem:[#allocation14_spill] sm:$0xff] }
  0xcd   : > { %v1280_v37 = vmul.f32 0.01, %v1272_v28  ;;  %v2244_v27 = vadd.f32 %v377_v29, %v2079_v23  ;;  %v2248_v57 = vmax.f32 %v460_v2, %v468_v42  ;;  %v2250_v58 = vmax.f32 %v759_v7, %v767_v48 }
  0xce   : > { %v2253_v59 = vadd.f32 %v378_v4, %v2081_v49  ;;  %v2255_v60 = vmax.f32 %v760_v56, %v768_v45  ;;  %v2257_v61 = vmax.f32 %v1015_v1, %v1023_v18  ;;  %v2259_v62 = vmax.f32 %v1016_v44, %v1024_v25  ;;  %v2817_v45 = vld [vmem:[#allocation53_spill] sm:$0xff]  ;;  %v2818_v18 = vld [vmem:[#allocation54_spill] sm:$0xff]  ;;  %v440_v1 = vpop.permute.xlu1 %439  ;;  %v2830_v4 = vld [vmem:[#allocation16_spill] sm:$0xff] }
  0xcf   : > { %v2262_v31 = vadd.f32 %v713_v52, %v2083_v3  ;;  %v2265_v23 = vadd.f32 %v714_v9, %v2085_v24  ;;  %v2268_v2 = vadd.f32 %v969_v51, %v2087_v33  ;;  %v2270_v7 = vmax.f32 %v1271_v47, %v1279_v41 }
  0xd0   : > { %v2273_v49 = vadd.f32 %v970_v17, %v2089_v34  ;;  %v2276_v56 = vadd.f32 %v1225_v8, %v2817_v45  ;;  %v2279_v25 = vadd.f32 %v1226_v0, %v2818_v18  ;;  %v2283_v3 = vmul.f32 %v2246_v54, %v2241_v16 }
  0xd1   : > { %v2287_v24 = vmul.f32 %v2246_v54, %v2248_v57  ;;  %v2291_v33 = vmul.f32 %v2250_v58, %v2246_v54  ;;  %v2293_v34 = vmax.f32 %v1272_v28, %v1280_v37  ;;  %v425_v8 = vmul.f32 %v2811_v39, %v397_v53  ;;  %v2826_v39 = vld [vmem:[#allocation12_spill] sm:$0xff] }
  0xd2   : > { %2819 = vst [vmem:[#allocation40_spill] sm:$0xff] %v2283_v3  ;;  %v2298_v9 = vmul.f32 %v2255_v60, %v2246_v54  ;;  %v2302_v51 = vmul.f32 %v2257_v61, %v2246_v54  ;;  %v2306_v52 = vmul.f32 %v2259_v62, %v2246_v54  ;;  %v426_v41 = vmul.f32 %v2813_v50, %v397_v53  ;;  %v2829_v50 = vld [vmem:[#allocation15_spill] sm:$0xff] }
  0xd3   : > { %2820 = vst [vmem:[#allocation41_spill] sm:$0xff] %v2287_v24  ;;  %2821 = vst [vmem:[#allocation42_spill] sm:$0xff] %v2291_v33  ;;  %v2311_v37 = vmul.f32 %v2270_v7, %v2246_v54  ;;  %v379_v44 = vadd.f32 %v2826_v39, %v2112_v63  ;;  %v380_v47 = vadd.f32 %v2827_v19, %v2115_v38  ;;  %v2831_v38 = vld [vmem:[#allocation17_spill] sm:$0xff]  ;;  %v2865_v3 = vld [vmem:[#allocation51_spill] sm:$0xff] }
  0xd4   : > { %2822 = vst [vmem:[#allocation43_spill] sm:$0xff] %v2298_v9  ;;  %2823 = vst [vmem:[#allocation28_spill] sm:$0xff] %v2302_v51  ;;  %v715_v42 = vadd.f32 %v2828_v35, %v2118_v15  ;;  %v745_v48 = vmul.f32 %v2814_v13, %v397_v53  ;;  %v746_v28 = vmul.f32 %v1867_v21, %v397_v53  ;;  %v2832_v13 = vld [vmem:[#allocation18_spill] sm:$0xff]  ;;  %v2833_v21 = vld [vmem:[#allocation19_spill] sm:$0xff] }
  0xd5   : > { %2824 = vst [vmem:[#allocation29_spill] sm:$0xff] %v2306_v52  ;;  %2825 = vst [vmem:[#allocation30_spill] sm:$0xff] %v2311_v37  ;;  %v716_v29 = vadd.f32 %v2829_v50, %v2121_v14  ;;  %v971_v17 = vadd.f32 %v2830_v4, %v2124_v55  ;;  %v429_v0 = vadd.f32 %v2215_v6, %v379_v44  ;;  %v2863_v24 = vld [vmem:[#allocation49_spill] sm:$0xff] }
  0xd6   : > { %v430_v63 = vadd.f32 %v2219_v43, %v380_v47  ;;  %v749_v45 = vadd.f32 %v741_v20, %v715_v42  ;;  %v972_v18 = vadd.f32 %v2831_v38, %v2127_v22  ;;  %v1227_v19 = vadd.f32 %v2832_v13, %v2130_v40  ;;  %v450_v22 = vpop.permute.xlu1 %449  ;;  %v2834_v47 = vld [vmem:[#allocation11_spill] sm:$0xff]  ;;  %v2837_v38 = vld [vmem:[#allocation22_spill] sm:$0xff] }
  0xd7   : > { %v750_v39 = vadd.f32 %v742_v30, %v716_v29  ;;  %v1005_v15 = vadd.f32 %v997_v10, %v971_v17  ;;  %v1228_v35 = vadd.f32 %v2833_v21, %v2133_v36  ;;  %v457_v14 = vadd.f32 %v440_v1, %v429_v0  ;;  %v2835_v17 = vld [vmem:[#allocation61_spill] sm:$0xff]  ;;  %v2840_v13 = vld [vmem:[#allocation55_spill] sm:$0xff]  ;;  %v2842_v21 = vld [vmem:[#allocation56_spill] sm:$0xff] }
  0xd8   : > { %v458_v50 = vadd.f32 %v440_v1, %v430_v63  ;;  %v757_v37 = vadd.f32 %v749_v45, %v440_v1  ;;  %v1006_v55 = vadd.f32 %v2225_v5, %v972_v18  ;;  %v1261_v43 = vadd.f32 %v2228_v32, %v1227_v19  ;;  %v2836_v5 = vld [vmem:[#allocation20_spill] sm:$0xff] }
  0xd9   : > { %v758_v6 = vadd.f32 %v750_v39, %v440_v1  ;;  %v1013_v44 = vadd.f32 %v1005_v15, %v440_v1  ;;  %v1262_v20 = vadd.f32 %v2231_v12, %v1228_v35  ;;  %v1001_v30 = vmul.f32 %v2815_v46, %v397_v53  ;;  %v2838_v12 = vld [vmem:[#allocation21_spill] sm:$0xff] }
  0xda   : > { %v1002_v10 = vmul.f32 %v1871_v26, %v397_v53  ;;  %v1257_v40 = vmul.f32 %v2816_v11, %v397_v53  ;;  %v1258_v36 = vmul.f32 %v2834_v47, %v397_v53  ;;  %v1014_v42 = vadd.f32 %v1006_v55, %v440_v1  ;;  %v2839_v26 = vld [vmem:[#allocation62_spill] sm:$0xff]  ;;  %v2841_v53 = vld [vmem:[#allocation23_spill] sm:$0xff]  ;;  %v2844_v55 = vld [vmem:[#allocation57_spill] sm:$0xff] }
  0xdb   : > { %v1269_v29 = vadd.f32 %v1261_v43, %v440_v1  ;;  %v1270_v4 = vadd.f32 %v1262_v20, %v440_v1  ;;  %v383_v0 = vadd.f32 %v2836_v5, %v2835_v17  ;;  %v465_v63 = vmul.f32 0.01, %v457_v14  ;;  %v2843_v1 = vld [vmem:[#allocation36_spill] sm:$0xff]  ;;  %v2845_v20 = vld [vmem:[#allocation37_spill] sm:$0xff]  ;;  %v2846_v47 = vld [vmem:[#allocation58_spill] sm:$0xff] }
  0xdc   : > { %v466_v45 = vmul.f32 0.01, %v458_v50  ;;  %v765_v32 = vmul.f32 0.01, %v757_v37  ;;  %v384_v18 = vadd.f32 %v2838_v12, %v2837_v38  ;;  %v766_v39 = vmul.f32 0.01, %v758_v6 }
  0xdd   : > { %v1021_v46 = vmul.f32 0.01, %v1013_v44  ;;  %v433_v15 = vadd.f32 %v425_v8, %v383_v0  ;;  %v719_v11 = vadd.f32 %v2840_v13, %v2839_v26  ;;  %v720_v35 = vadd.f32 %v2842_v21, %v2841_v53  ;;  %v2847_v38 = vld [vmem:[#allocation38_spill] sm:$0xff]  ;;  %v2848_v12 = vld [vmem:[#allocation59_spill] sm:$0xff]  ;;  %v2850_v0 = vld [vmem:[#allocation60_spill] sm:$0xff]  ;;  %v2358_v26 = vpop.permute.xlu1 %454 }
  0xde   : > { %v434_v19 = vadd.f32 %v426_v41, %v384_v18  ;;  %v975_v43 = vadd.f32 %v2844_v55, %v2843_v1  ;;  %v976_v17 = vadd.f32 %v2846_v47, %v2845_v20  ;;  %v1231_v51 = vadd.f32 %v2848_v12, %v2847_v38  ;;  %v2849_v8 = vld [vmem:[#allocation39_spill] sm:$0xff] }
  0xdf   : > { %v2352_v5 = vadd.f32 %v450_v22, %v433_v15  ;;  %v753_v52 = vadd.f32 %v745_v48, %v719_v11  ;;  %v1232_v9 = vadd.f32 %v2850_v0, %v2849_v8  ;;  %v1022_v41 = vmul.f32 0.01, %v1014_v42  ;;  %v2858_v8 = vld [vmem:[#allocation44_spill] sm:$0xff] }
  0xe0   : > { %v2360_v18 = vadd.f32 %v450_v22, %v434_v19  ;;  %v754_v13 = vadd.f32 %v746_v28, %v720_v35  ;;  %v1009_v53 = vadd.f32 %v1001_v30, %v975_v43  ;;  %v1010_v1 = vadd.f32 %v1002_v10, %v976_v17 }
  0xe1   : > { %v2362_v21 = vadd.f32 %v753_v52, %v450_v22  ;;  %v1265_v55 = vadd.f32 %v1257_v40, %v1231_v51  ;;  %v1266_v15 = vadd.f32 %v1258_v36, %v1232_v9  ;;  %v1277_v20 = vmul.f32 0.01, %v1269_v29  ;;  %v561_v40 = vpop.permute.xlu0 %560 }
  0xe2   : > { %v1278_v48 = vmul.f32 0.01, %v1270_v4  ;;  %v2364_v11 = vadd.f32 %v754_v13, %v450_v22  ;;  %v2366_v47 = vadd.f32 %v1009_v53, %v450_v22  ;;  %v2369_v38 = vmul.f32 0.01, %v2352_v5 }
  0xe3   : > { %v2371_v12 = vadd.f32 %v1010_v1, %v450_v22  ;;  %v2373_v19 = vadd.f32 %v1265_v55, %v450_v22  ;;  %v2375_v28 = vadd.f32 %v1266_v15, %v450_v22  ;;  %v2378_v52 = vmul.f32 0.01, %v2360_v18  ;;  %v565_v22 = vpop.permute.xlu1 %564  ;;  %v2859_v1 = vld [vmem:[#allocation45_spill] sm:$0xff] }
  0xe4   : > { %v2380_v51 = vmax.f32 %v457_v14, %v465_v63  ;;  %v2382_v9 = vmax.f32 %v458_v50, %v466_v45  ;;  %v2384_v30 = vmax.f32 %v757_v37, %v765_v32  ;;  %v2387_v10 = vmul.f32 0.01, %v2362_v21 }
  0xe5   : > { %2851 = vst [vmem:[#allocation31_spill] sm:$0xff] %v2375_v28  ;;  %v2389_v36 = vmax.f32 %v758_v6, %v766_v39  ;;  %v2391_v35 = vmax.f32 %v1013_v44, %v1021_v46  ;;  %v2393_v43 = vmax.f32 %v1014_v42, %v1022_v41  ;;  %v2396_v17 = vmul.f32 0.01, %v2364_v11 }
  0xe6   : > { %v2399_v14 = vmul.f32 0.01, %v2366_v47  ;;  %v2401_v50 = vmax.f32 %v1269_v29, %v1277_v20  ;;  %v2403_v37 = vmax.f32 %v1270_v4, %v1278_v48  ;;  %v2407_v63 = vmul.f32 %v2293_v34, %v2246_v54  ;;  %v2860_v48 = vld [vmem:[#allocation46_spill] sm:$0xff] }
  0xe7   : > { %2852 = vst [vmem:[#allocation24_spill] sm:$0xff] %v2391_v35  ;;  %2853 = vst [vmem:[#allocation32_spill] sm:$0xff] %v2393_v43  ;;  %v2410_v6 = vmul.f32 0.01, %v2371_v12  ;;  %v2413_v44 = vmul.f32 0.01, %v2373_v19  ;;  %v575_v45 = vmul.f32 %v561_v40, %v2380_v51  ;;  %v576_v29 = vmul.f32 %v561_v40, %v2382_v9 }
  0xe8   : > { %2854 = vst [vmem:[#allocation33_spill] sm:$0xff] %v2401_v50  ;;  %2855 = vst [vmem:[#allocation34_spill] sm:$0xff] %v2403_v37  ;;  %v2416_v42 = vmul.f32 0.01, %v2375_v28  ;;  %v831_v4 = vmul.f32 %v2384_v30, %v561_v40  ;;  %v577_v32 = vmul.f32 %v565_v22, %v2241_v16  ;;  %v832_v54 = vmul.f32 %v2389_v36, %v561_v40 }
  0xe9   : > { %2856 = vst [vmem:[#allocation25_spill] sm:$0xff] %v2407_v63  ;;  %v1087_v39 = vmul.f32 %v2391_v35, %v561_v40  ;;  %v1088_v46 = vmul.f32 %v2393_v43, %v561_v40  ;;  %v435_v0 = vadd.f32 %v2858_v8, %v2244_v27  ;;  %v1343_v41 = vmul.f32 %v2401_v50, %v561_v40  ;;  %v2861_v8 = vld [vmem:[#allocation47_spill] sm:$0xff] }
  0xea   : > { %2857 = vst [vmem:[#allocation26_spill] sm:$0xff] %v2416_v42  ;;  %v1344_v13 = vmul.f32 %v2403_v37, %v561_v40  ;;  %v578_v53 = vmul.f32 %v565_v22, %v2248_v57  ;;  %v436_v55 = vadd.f32 %v2859_v1, %v2253_v59  ;;  %v833_v16 = vmul.f32 %v2250_v58, %v565_v22  ;;  %v2862_v40 = vld [vmem:[#allocation48_spill] sm:$0xff] }
  0xeb   : > { %v834_v15 = vmul.f32 %v2255_v60, %v565_v22  ;;  %v463_v20 = vadd.f32 %v2358_v26, %v435_v0  ;;  %v755_v63 = vadd.f32 %v2860_v48, %v2262_v31  ;;  %v756_v33 = vadd.f32 %v2861_v8, %v2265_v23  ;;  %v2864_v60 = vld [vmem:[#allocation50_spill] sm:$0xff] }
  0xec   : > { %v464_v27 = vadd.f32 %v2358_v26, %v436_v55  ;;  %v1011_v57 = vadd.f32 %v2862_v40, %v2268_v2  ;;  %v1012_v59 = vadd.f32 %v2863_v24, %v2273_v49  ;;  %v1267_v0 = vadd.f32 %v2864_v60, %v2276_v56 }
  0xed   : > { %v471_v1 = vmul.f32 0.01, %v463_v20  ;;  %v763_v58 = vadd.f32 %v755_v63, %v2358_v26  ;;  %v1268_v31 = vadd.f32 %v2865_v3, %v2279_v25  ;;  %v764_v55 = vadd.f32 %v756_v33, %v2358_v26  ;;  %v2456_v25 = vpop.permute.xlu1 %483 }
  0xee   : > { %v472_v48 = vmul.f32 0.01, %v464_v27  ;;  %v1019_v23 = vadd.f32 %v1011_v57, %v2358_v26  ;;  %v1020_v8 = vadd.f32 %v1012_v59, %v2358_v26  ;;  %v1089_v2 = vmul.f32 %v2257_v61, %v565_v22 }
  0xef   : > { %v771_v40 = vmul.f32 0.01, %v763_v58  ;;  %v1275_v49 = vadd.f32 %v1267_v0, %v2358_v26  ;;  %v1276_v24 = vadd.f32 %v1268_v31, %v2358_v26  ;;  %v1090_v63 = vmul.f32 %v2259_v62, %v565_v22  ;;  %v573_v62 = vpop.permute.xlu0 %572 }
  0xf0   : > { %v772_v56 = vmul.f32 0.01, %v764_v55  ;;  %v1027_v60 = vmul.f32 0.01, %v1019_v23  ;;  %v1028_v37 = vmul.f32 0.01, %v1020_v8  ;;  %v1345_v3 = vmul.f32 %v2270_v7, %v565_v22 }
  0xf1   : > { %v1346_v33 = vmul.f32 %v2293_v34, %v565_v22  ;;  %v1283_v57 = vmul.f32 0.01, %v1275_v49  ;;  %v1284_v59 = vmul.f32 0.01, %v1276_v24  ;;  %v583_v50 = vadd.f32 %v577_v32, %v575_v45 }
  0xf2   : > { %v2460_v61 = vmax.f32 %v463_v20, %v471_v1  ;;  %v2462_v43 = vmax.f32 %v464_v27, %v472_v48  ;;  %v2464_v0 = vmax.f32 %v763_v58, %v771_v40  ;;  %v592_v26 = vadd.f32 %v578_v53, %v576_v29 }
  0xf3   : > { %v2466_v31 = vmax.f32 %v764_v55, %v772_v56  ;;  %v2468_v35 = vmax.f32 %v1019_v23, %v1027_v60  ;;  %v2470_v28 = vmax.f32 %v1020_v8, %v1028_v37  ;;  %v839_v7 = vadd.f32 %v833_v16, %v831_v4  ;;  %v569_v4 = vpop.permute.xlu1 %568  ;;  %v2867_v23 = vld [vmem:[#allocation31_spill] sm:$0xff] }
  0xf4   : > { %v848_v42 = vadd.f32 %v834_v15, %v832_v54  ;;  %v2472_v34 = vmax.f32 %v1275_v49, %v1283_v57  ;;  %v2474_v22 = vmax.f32 %v1276_v24, %v1284_v59  ;;  %v1095_v45 = vadd.f32 %v1089_v2, %v1087_v39 }
  0xf5   : > { %v1104_v32 = vadd.f32 %v1090_v63, %v1088_v46  ;;  %v1351_v20 = vadd.f32 %v1345_v3, %v1343_v41  ;;  %v1360_v27 = vadd.f32 %v1346_v33, %v1344_v13  ;;  %v581_v1 = vmul.f32 %v573_v62, %v2460_v61 }
  0xf6   : > { %v582_v29 = vmul.f32 %v573_v62, %v2462_v43  ;;  %v837_v53 = vmul.f32 %v2464_v0, %v573_v62  ;;  %v2481_v37 = vmul.f32 %v2456_v25, %v2380_v51  ;;  %v838_v54 = vmul.f32 %v2466_v31, %v573_v62 }
  0xf7   : > { %v1093_v16 = vmul.f32 %v2468_v35, %v573_v62  ;;  %v1094_v39 = vmul.f32 %v2470_v28, %v573_v62  ;;  %v2488_v46 = vmax.f32 %v2352_v5, %v2369_v38  ;;  %v1349_v41 = vmul.f32 %v2472_v34, %v573_v62 }
  0xf8   : > { %v1350_v13 = vmul.f32 %v2474_v22, %v573_v62  ;;  %v2494_v15 = vmul.f32 %v2456_v25, %v2382_v9  ;;  %v2498_v51 = vmax.f32 %v2360_v18, %v2378_v52  ;;  %v2502_v58 = vmul.f32 %v2384_v30, %v2456_v25 }
  0xf9   : > { %v2506_v5 = vmul.f32 %v2389_v36, %v2456_v25  ;;  %v579_v38 = vmul.f32 %v569_v4, %v2488_v46  ;;  %v2511_v48 = vmax.f32 %v2362_v21, %v2387_v10  ;;  %v2516_v18 = vmax.f32 %v2364_v11, %v2396_v17  ;;  %v2866_v10 = vld [vmem:[#allocation26_spill] sm:$0xff] }
  0xfa   : > { %v580_v9 = vmul.f32 %v569_v4, %v2498_v51  ;;  %v2520_v52 = vmax.f32 %v2366_v47, %v2399_v14  ;;  %v2524_v30 = vmax.f32 %v2371_v12, %v2410_v6  ;;  %v2529_v21 = vmax.f32 %v2373_v19, %v2413_v44 }
  0xfb   : > { %v584_v36 = vadd.f32 %v583_v50, %v579_v38  ;;  %v835_v55 = vmul.f32 %v2511_v48, %v569_v4  ;;  %v2533_v8 = vmax.f32 %v2867_v23, %v2866_v10  ;;  %v836_v17 = vmul.f32 %v2516_v18, %v569_v4  ;;  %v2868_v23 = vld [vmem:[#allocation24_spill] sm:$0xff] }
  0xfc   : > { %v593_v11 = vadd.f32 %v592_v26, %v580_v9  ;;  %v1091_v47 = vmul.f32 %v2520_v52, %v569_v4  ;;  %v1092_v14 = vmul.f32 %v2524_v30, %v569_v4  ;;  %v1347_v50 = vmul.f32 %v2529_v21, %v569_v4 }
  0xfd   : > { %v585_v12 = vadd.f32 %v584_v36, %v581_v1  ;;  %v840_v6 = vadd.f32 %v839_v7, %v835_v55  ;;  %v1348_v2 = vmul.f32 %v2533_v8, %v569_v4  ;;  %v849_v19 = vadd.f32 %v848_v42, %v836_v17  ;;  %v2870_v17 = vld [vmem:[#allocation33_spill] sm:$0xff] }
  0xfe   : > { %v594_v40 = vadd.f32 %v593_v11, %v582_v29  ;;  %v1096_v44 = vadd.f32 %v1095_v45, %v1091_v47  ;;  %v1105_v49 = vadd.f32 %v1104_v32, %v1092_v14  ;;  %v1352_v56 = vadd.f32 %v1351_v20, %v1347_v50  ;;  %v2871_v14 = vld [vmem:[#allocation34_spill] sm:$0xff]  ;;  %v2872_v50 = vld [vmem:[#allocation40_spill] sm:$0xff] }
  0xff   : > { %v586_v24 = vrot.slane %v585_v12, 4  ;;  %v841_v63 = vadd.f32 %v840_v6, %v837_v53  ;;  %v1361_v60 = vadd.f32 %v1360_v27, %v1348_v2  ;;  %v850_v33 = vadd.f32 %v849_v19, %v838_v54  ;;  %v494_v6 = vpop.permute.xlu1 %493 }
 0x100   : > { %v595_v3 = vrot.slane %v594_v40, 4  ;;  %v1097_v57 = vadd.f32 %v1096_v44, %v1093_v16  ;;  %v1106_v59 = vadd.f32 %v1105_v49, %v1094_v39  ;;  %v1353_v1 = vadd.f32 %v1352_v56, %v1349_v41  ;;  %v2873_v49 = vld [vmem:[#allocation41_spill] sm:$0xff] }
 0x101   : > { %v587_v26 = vadd.f32 %v586_v24, %v585_v12  ;;  %v842_v62 = vrot.slane %v841_v63, 4  ;;  %v1362_v7 = vadd.f32 %v1361_v60, %v1350_v13  ;;  %v851_v9 = vrot.slane %v850_v33, 4  ;;  %v2869_v13 = vld [vmem:[#allocation32_spill] sm:$0xff] }
 0x102   : > { %v596_v38 = vadd.f32 %v595_v3, %v594_v40  ;;  %v1098_v36 = vrot.slane %v1097_v57, 4  ;;  %v1107_v4 = vrot.slane %v1106_v59, 4  ;;  %v1354_v45 = vrot.slane %v1353_v1, 4  ;;  %v2874_v3 = vld [vmem:[#allocation42_spill] sm:$0xff] }
 0x103   : > { %v588_v29 = vrot.slane %v587_v26, 2  ;;  %v843_v42 = vadd.f32 %v842_v62, %v841_v63  ;;  %v1363_v32 = vrot.slane %v1362_v7, 4  ;;  %v852_v53 = vadd.f32 %v851_v9, %v850_v33 }
 0x104   : > { %v597_v55 = vrot.slane %v596_v38, 2  ;;  %v1099_v20 = vadd.f32 %v1098_v36, %v1097_v57  ;;  %v1108_v27 = vadd.f32 %v1107_v4, %v1106_v59  ;;  %v1355_v16 = vadd.f32 %v1354_v45, %v1353_v1  ;;  %v2877_v1 = vld [vmem:[#allocation29_spill] sm:$0xff] }
 0x105   : > { %v589_v10 = vadd.f32 %v588_v29, %v587_v26  ;;  %v844_v54 = vrot.slane %v843_v42, 2  ;;  %v1364_v39 = vadd.f32 %v1363_v32, %v1362_v7  ;;  %v1037_v41 = vmul.f32 %v2868_v23, %v2456_v25  ;;  %v2879_v36 = vld [vmem:[#allocation25_spill] sm:$0xff] }
 0x106   : > { %v1038_v11 = vmul.f32 %v2869_v13, %v2456_v25  ;;  %v1293_v47 = vmul.f32 %v2870_v17, %v2456_v25  ;;  %v1294_v12 = vmul.f32 %v2871_v14, %v2456_v25  ;;  %v509_v2 = vadd.f32 %v2872_v50, %v2481_v37  ;;  %v2875_v25 = vld [vmem:[#allocation43_spill] sm:$0xff]  ;;  %v2876_v37 = vld [vmem:[#allocation28_spill] sm:$0xff] }
 0x107   : > { %v2550_v40 = vadd.f32 %v597_v55, %v596_v38  ;;  %v853_v19 = vrot.slane %v852_v53, 2  ;;  %v1100_v44 = vrot.slane %v1099_v20, 2  ;;  %v518_v24 = vadd.f32 %v2873_v49, %v2494_v15  ;;  %v2878_v38 = vld [vmem:[#allocation30_spill] sm:$0xff] }
 0x108   : > { %v590_v63 = vrot.slane %v589_v10, 1  ;;  %v2554_v56 = vadd.f32 %v844_v54, %v843_v42  ;;  %v1109_v60 = vrot.slane %v1108_v27, 2  ;;  %v789_v33 = vadd.f32 %v2874_v3, %v2502_v58  ;;  %v499_v54 = vpop.permute.xlu1 %498 }
 0x109   : > { %v798_v57 = vadd.f32 %v2875_v25, %v2506_v5  ;;  %v1356_v59 = vrot.slane %v1355_v16, 2  ;;  %v1365_v26 = vrot.slane %v1364_v39, 2  ;;  %v1045_v62 = vadd.f32 %v2876_v37, %v1037_v41 }
 0x10a   : > { %v1054_v7 = vadd.f32 %v2877_v1, %v1038_v11  ;;  %v1301_v9 = vadd.f32 %v2878_v38, %v1293_v47  ;;  %v1310_v15 = vadd.f32 %v2879_v36, %v1294_v12  ;;  %v599_v4 = vrot.slane %v2550_v40, 1 }
 0x10b   : > { %v2565_v29 = vadd.f32 %v853_v19, %v852_v53  ;;  %v2567_v42 = vadd.f32 %v1100_v44, %v1099_v20  ;;  %v505_v58 = vmul.f32 %v494_v6, %v2488_v46  ;;  %v2570_v45 = vadd.f32 %v590_v63, %v589_v10 }
 0x10c   : > { %v846_v5 = vrot.slane %v2554_v56, 1  ;;  %v2573_v32 = vadd.f32 %v1109_v60, %v1108_v27  ;;  %v506_v55 = vmul.f32 %v494_v6, %v2498_v51  ;;  %v2576_v23 = vadd.f32 %v1356_v59, %v1355_v16 }
 0x10d   : > { %v2578_v41 = vadd.f32 %v1365_v26, %v1364_v39  ;;  %v510_v13 = vadd.f32 %v509_v2, %v505_v58  ;;  %v785_v53 = vmul.f32 %v2511_v48, %v494_v6  ;;  %v786_v11 = vmul.f32 %v2516_v18, %v494_v6 }
 0x10e   : > { %v519_v20 = vadd.f32 %v518_v24, %v506_v55  ;;  %v1041_v46 = vmul.f32 %v2520_v52, %v494_v6  ;;  %v1042_v10 = vmul.f32 %v2524_v30, %v494_v6  ;;  %v1297_v27 = vmul.f32 %v2529_v21, %v494_v6 }
 0x10f   : > { %v790_v17 = vadd.f32 %v789_v33, %v785_v53  ;;  %v1298_v51 = vmul.f32 %v2533_v8, %v494_v6  ;;  %v507_v16 = vmul.f32 %v499_v54, %v2460_v61  ;;  %v799_v47 = vadd.f32 %v798_v57, %v786_v11 }
 0x110   : > { %v1046_v39 = vadd.f32 %v1045_v62, %v1041_v46  ;;  %v1055_v14 = vadd.f32 %v1054_v7, %v1042_v10  ;;  %v508_v12 = vmul.f32 %v499_v54, %v2462_v43  ;;  %v1302_v48 = vadd.f32 %v1301_v9, %v1297_v27 }
 0x111   : > { %v1311_v50 = vadd.f32 %v1310_v15, %v1298_v51  ;;  %v511_v2 = vadd.f32 %v510_v13, %v507_v16  ;;  %v787_v18 = vmul.f32 %v2464_v0, %v499_v54  ;;  %v788_v30 = vmul.f32 %v2466_v31, %v499_v54 }
 0x112   : > { %v520_v52 = vadd.f32 %v519_v20, %v508_v12  ;;  %v1043_v19 = vmul.f32 %v2468_v35, %v499_v54  ;;  %v1044_v21 = vmul.f32 %v2470_v28, %v499_v54  ;;  %v1299_v61 = vmul.f32 %v2472_v34, %v499_v54 }
 0x113   : > { %v512_v8 = vrot.slane %v511_v2, 4  ;;  %v791_v6 = vadd.f32 %v790_v17, %v787_v18  ;;  %v1300_v44 = vmul.f32 %v2474_v22, %v499_v54  ;;  %v800_v43 = vadd.f32 %v799_v47, %v788_v30 }
 0x114   : > { %v521_v49 = vrot.slane %v520_v52, 4  ;;  %v1047_v24 = vadd.f32 %v1046_v39, %v1043_v19  ;;  %v1056_v63 = vadd.f32 %v1055_v14, %v1044_v21  ;;  %v1303_v0 = vadd.f32 %v1302_v48, %v1299_v61 }
 0x115   : > { %v513_v60 = vadd.f32 %v512_v8, %v511_v2  ;;  %v792_v3 = vrot.slane %v791_v6, 4  ;;  %v1312_v33 = vadd.f32 %v1311_v50, %v1300_v44  ;;  %v801_v31 = vrot.slane %v800_v43, 4  ;;  %v530_v2 = vpop.permute.xlu1 %529 }
 0x116   : > { %v522_v25 = vadd.f32 %v521_v49, %v520_v52  ;;  %v1048_v57 = vrot.slane %v1047_v24, 4  ;;  %v1057_v35 = vrot.slane %v1056_v63, 4  ;;  %v1304_v26 = vrot.slane %v1303_v0, 4 }
 0x117   : > { %v514_v59 = vrot.slane %v513_v60, 2  ;;  %v793_v28 = vadd.f32 %v792_v3, %v791_v6  ;;  %v1313_v37 = vrot.slane %v1312_v33, 4  ;;  %v802_v34 = vadd.f32 %v801_v31, %v800_v43 }
 0x118   : > { %v523_v62 = vrot.slane %v522_v25, 2  ;;  %v1049_v1 = vadd.f32 %v1048_v57, %v1047_v24  ;;  %v1058_v22 = vadd.f32 %v1057_v35, %v1056_v63  ;;  %v1305_v9 = vadd.f32 %v1304_v26, %v1303_v0 }
 0x119   : > { %v515_v7 = vadd.f32 %v514_v59, %v513_v60  ;;  %v794_v38 = vrot.slane %v793_v28, 2  ;;  %v1314_v36 = vadd.f32 %v1313_v37, %v1312_v33  ;;  %v803_v58 = vrot.slane %v802_v34, 2  ;;  %v2880_v37 = vld [vmem:[#allocation52_spill] sm:$0xff] }
 0x11a   : > { %v524_v15 = vadd.f32 %v523_v62, %v522_v25  ;;  %v1050_v55 = vrot.slane %v1049_v1, 2  ;;  %v1059_v54 = vrot.slane %v1058_v22, 2  ;;  %v1306_v20 = vrot.slane %v1305_v9, 2 }
 0x11b   : > { %v516_v13 = vrot.slane %v515_v7, 1  ;;  %v795_v53 = vadd.f32 %v794_v38, %v793_v28  ;;  %v1315_v11 = vrot.slane %v1314_v36, 2  ;;  %v804_v10 = vadd.f32 %v803_v58, %v802_v34 }
 0x11c   : > { %v525_v46 = vrot.slane %v524_v15, 1  ;;  %v1051_v17 = vadd.f32 %v1050_v55, %v1049_v1  ;;  %v1060_v27 = vadd.f32 %v1059_v54, %v1058_v22  ;;  %v855_v51 = vrot.slane %v2565_v29, 1 }
 0x11d   : > { %v517_v16 = vadd.f32 %v516_v13, %v515_v7  ;;  %v796_v47 = vrot.slane %v795_v53, 1  ;;  %v1307_v39 = vadd.f32 %v1306_v20, %v1305_v9  ;;  %v600_v14 = vadd.f32 %v599_v4, %v2550_v40 }
 0x11e   : > { %v526_v12 = vadd.f32 %v525_v46, %v524_v15  ;;  %v805_v48 = vrot.slane %v804_v10, 1  ;;  %v1052_v50 = vrot.slane %v1051_v17, 1  ;;  %v1061_v52 = vrot.slane %v1060_v27, 1 }
 0x11f   : > { %v797_v18 = vadd.f32 %v796_v47, %v795_v53  ;;  %v1316_v30 = vadd.f32 %v1315_v11, %v1314_v36  ;;  %v532_v19 = vadd.f32 %v530_v2, %v517_v16  ;;  %v847_v21 = vadd.f32 %v846_v5, %v2554_v56 }
 0x120   : > { %v1102_v8 = vrot.slane %v2567_v42, 1  ;;  %v806_v6 = vadd.f32 %v805_v48, %v804_v10  ;;  %v533_v61 = vadd.f32 %v530_v2, %v526_v12  ;;  %v856_v44 = vadd.f32 %v855_v51, %v2565_v29 }
 0x121   : > { %v1111_v40 = vrot.slane %v2573_v32, 1  ;;  %v1308_v4 = vrot.slane %v1307_v39, 1  ;;  %1555 = vtanh.f32 %v532_v19  ;;  %v1053_v49 = vadd.f32 %v1052_v50, %v1051_v17 }
 0x122   : > { %1557 = vtanh.f32 %v533_v61  ;;  %v601_v43 = vadd.f32 %v2570_v45, %v530_v2  ;;  %v602_v24 = vadd.f32 %v600_v14, %v530_v2  ;;  %v1062_v63 = vadd.f32 %v1061_v52, %v1060_v27 }
 0x123   : > { %v1317_v60 = vrot.slane %v1316_v30, 1  ;;  %v807_v3 = vadd.f32 %v797_v18, %v530_v2  ;;  %v808_v0 = vadd.f32 %v806_v6, %v530_v2  ;;  %v1103_v56 = vadd.f32 %v1102_v8, %v2567_v42 }
 0x124   : > { %v1358_v5 = vrot.slane %v2576_v23, 1  ;;  %1559 = vtanh.f32 %v601_v43  ;;  %v857_v33 = vadd.f32 %v847_v21, %v530_v2  ;;  %v1112_v29 = vadd.f32 %v1111_v40, %v2573_v32 }
 0x125   : > { %v1367_v25 = vrot.slane %v2578_v41, 1  ;;  %1561 = vtanh.f32 %v602_v24  ;;  %v858_v31 = vadd.f32 %v856_v44, %v530_v2  ;;  %v1309_v57 = vadd.f32 %v1308_v4, %v1307_v39 }
 0x126   : > { %1563 = vtanh.f32 %v807_v3  ;;  %v1063_v45 = vadd.f32 %v1053_v49, %v530_v2  ;;  %v1318_v35 = vadd.f32 %v1317_v60, %v1316_v30  ;;  %v1064_v59 = vadd.f32 %v1062_v63, %v530_v2 }
 0x127   : > { %1565 = vtanh.f32 %v808_v0  ;;  %v1359_v28 = vadd.f32 %v1358_v5, %v2576_v23  ;;  %v1113_v42 = vadd.f32 %v1103_v56, %v530_v2  ;;  %v1368_v26 = vadd.f32 %v1367_v25, %v2578_v41  ;;  %v2881_v23 = vld [vmem:[#allocation5_spill] sm:$0xff] }
 0x128   : > { %1567 = vtanh.f32 %v857_v33  ;;  %v541_v62 = vunpack.c.0.s8 %v2880_v37  ;;  %v1114_v32 = vadd.f32 %v1112_v29, %v530_v2  ;;  %v1319_v34 = vadd.f32 %v1309_v57, %v530_v2 }
 0x129   : > { %1569 = vtanh.f32 %v858_v31  ;;  %v1320_v22 = vadd.f32 %v1318_v35, %v530_v2  ;;  %v1369_v38 = vadd.f32 %v1359_v28, %v530_v2  ;;  %v1370_v15 = vadd.f32 %v1368_v26, %v530_v2 }
 0x12a   : > { %1571 = vtanh.f32 %v1063_v45  ;;  %v544_v36 = vsub.s32 %v541_v62, %v2881_v23  ;;  %v2882_v46 = vlaneseq }
 0x12b   : > { %v1556_v1 = vpop.eup %1555  ;;  %1573 = vtanh.f32 %v1064_v59 }
 0x12c   : > { %v1558_v7 = vpop.eup %1557  ;;  %1575 = vtanh.f32 %v1113_v42  ;;  %vm2617_vm0 = vcmp.lt.s32.totalorder %v2882_v46, 256 }
 0x12d   : > { %v538_v9 = vcombine.low %v1556_v1, %v1558_v7  ;;  %1577 = vtanh.f32 %v1114_v32 }
 0x12e   : > { %v1560_v41 = vpop.eup %1559  ;;  %1579 = vtanh.f32 %v1319_v34 }
 0x12f   : > { %v1562_v58 = vpop.eup %1561  ;;  %v545_v55 = vrot.slane %v538_v9, %v544_v36  ;;  %1581 = vtanh.f32 %v1320_v22 }
 0x130   : > { %v1564_v54 = vpop.eup %1563  ;;  %v607_v13 = vcombine.low %v1560_v41, %v1562_v58  ;;  %1583 = vtanh.f32 %v1369_v38 }
 0x131   : > { %v1566_v53 = vpop.eup %1565  ;;  %v552_v20 = vrot.slane %v545_v55, %v544_v36  ;;  %1585 = vtanh.f32 %v1370_v15 }
 0x132   : > { %v1568_v11 = vpop.eup %1567  ;;  %v614_v17 = vrot.slane %v607_v13, %v544_v36  ;;  %v813_v27 = vcombine.low %v1564_v54, %v1566_v53 }
 0x133   : > { %v1570_v51 = vpop.eup %1569  ;;  %558 = vst.msk [vmem:[%s2621_s6] ss:$2 sm:$0x3] %vm2617_vm0, %v552_v20 }
 0x134   : > { %v1572_v16 = vpop.eup %1571  ;;  %v615_v47 = vcombine.high %v614_v17, %v614_v17  ;;  %v820_v39 = vrot.slane %v813_v27, %v544_v36  ;;  %v863_v14 = vcombine.low %v1568_v11, %v1570_v51 }
 0x135   : > { %v1574_v12 = vpop.eup %1573 }
 0x136   : > { %v1576_v48 = vpop.eup %1575  ;;  %v622_v50 = vrot.slane %v615_v47, %v544_v36  ;;  %v827_v2 = vrot.slane %v820_v39, %v544_v36  ;;  %v870_v18 = vrot.slane %v863_v14, %v544_v36  ;;  %v1069_v52 = vcombine.low %v1572_v16, %v1574_v12 }
 0x137   : > { %v1578_v30 = vpop.eup %1577 }
 0x138   : > { %v1580_v19 = vpop.eup %1579  ;;  %1478 = vst.msk [vmem:[%s2621_s6 + $0x1] ss:$2 sm:$0x3] %vm2617_vm0, %v622_v50  ;;  %1480 = vst.msk [vmem:[%s2621_s6 + $0x4] ss:$2 sm:$0x3] %vm2617_vm0, %v827_v2  ;;  %v871_v21 = vcombine.high %v870_v18, %v870_v18  ;;  %v1076_v8 = vrot.slane %v1069_v52, %v544_v36  ;;  %v1119_v6 = vcombine.low %v1576_v48, %v1578_v30 }
 0x139   : > { %v1582_v61 = vpop.eup %1581 }
 0x13a   : > { %v1584_v44 = vpop.eup %1583  ;;  %v878_v40 = vrot.slane %v871_v21, %v544_v36  ;;  %v1083_v4 = vrot.slane %v1076_v8, %v544_v36  ;;  %v1126_v49 = vrot.slane %v1119_v6, %v544_v36  ;;  %v1325_v43 = vcombine.low %v1580_v19, %v1582_v61 }
 0x13b   : > { %v1586_v24 = vpop.eup %1585 }
 0x13c   : > { %1481 = vst.msk [vmem:[%s2621_s6 + $0x5] ss:$2 sm:$0x3] %vm2617_vm0, %v878_v40  ;;  %1483 = vst.msk [vmem:[%s2621_s6 + $0x8] ss:$2 sm:$0x3] %vm2617_vm0, %v1083_v4  ;;  %v1127_v63 = vcombine.high %v1126_v49, %v1126_v49  ;;  %v1332_v60 = vrot.slane %v1325_v43, %v544_v36  ;;  %v1375_v3 = vcombine.low %v1584_v44, %v1586_v24 }
 0x13e   : > { %v1134_v0 = vrot.slane %v1127_v63, %v544_v36  ;;  %v1339_v56 = vrot.slane %v1332_v60, %v544_v36  ;;  %v1382_v5 = vrot.slane %v1375_v3, %v544_v36 }
 0x140   : > { %1484 = vst.msk [vmem:[%s2621_s6 + $0x9] ss:$2 sm:$0x3] %vm2617_vm0, %v1134_v0  ;;  %1486 = vst.msk [vmem:[%s2621_s6 + $0xc] ss:$2 sm:$0x3] %vm2617_vm0, %v1339_v56  ;;  %v1383_v33 = vcombine.high %v1382_v5, %v1382_v5 }
 0x142   : > { %v1390_v29 = vrot.slane %v1383_v33, %v544_v36 }
 0x144   : > { %1487 = vst.msk [vmem:[%s2621_s6 + $0xd] ss:$2 sm:$0x3] %vm2617_vm0, %v1390_v29 }
 0x145   : > { %1600 = shalt.err (!%p1597_p3)
}
 0x146   : > { %s1601_s16 = scalar_lea.hbm %s2649_s11, 256  ;;  %s1605_s25 = scalar_lea.hbm %s2701_s5, 512 }
 0x147   : > { %p1602_p4 = scmp.ne.s32.totalorder %s2649_s11, %s1601_s16  ;;  %p1606_p9 = scmp.lt.u32.totalorder %s2649_s11, %s2701_s5 }
 0x148   : > { %p1607_p10 = scmp.lt.u32.totalorder %s1605_s25, %s1601_s16  ;;  %p1609_p12 = scmp.lt.u32.totalorder %s1601_s16, %s2649_s11 }
 0x149   : > { %p1603_p7 = pnand %p1602_p4, %p1725_p5 }
 0x14a   : > { %p1608_p11 = por %p1607_p10, %p1606_p9 }
 0x14b   : > { %p1604_p8 = pneg %p1603_p7 }
 0x14c   : > { %p1610_p13 = por %p1609_p12, %p1608_p11 }
 0x14e   : > { %p1611_p0 = pnand %p1610_p13, %p1604_p8 }
 0x150   : > { %1614 = shalt.err (!%p1611_p0)
}
 0x151   : > { %1494 = dma.vmem_to_hbm [thread:$0]  (%p1725_p5), %s2651_s8, 256, %s2649_s11, %s1395_s22  }
 0x152 PF: > { %p1500_p1 = scmp.ge.s32.totalorder %s1649_s21, 2  ;;  %s1421_s6 = sand.u32 1, %s1637_s18  }
 0x153   : > { %s1422_s7 = scalar_lea.sflag [#allocation3], %s1421_s6 }
 0x154   : > { %p1497_p2 = pnand %p1500_p1, %p1729_p6 }
 0x156   : > { %1632 = dma.done.wait (!%p1497_p2), %s1422_s7, 256  }
 0x157   : > { %1634 = vsyncadd (!%p1497_p2), %s1422_s7, 4294967040  ;;  %p15_p3 = scmp.ge.s32.totalorder %s1712_s24, 4   ;;  %s2885_s18 = smov %s1641_s19 }
 0x158   : > { %s2886_s19 = smov %s1645_s20  ;;  %s2887_s20 = smov %s1723_s27 }
 0x159   : > { %s2888_s21 = smov %s1712_s24  ;;  %17 = sbr.rel (!%p15_p3) target bundleno = 3 (0x3), region = 85 }
 0x160   :  { %1427 = vsyncpa [#allocation3], 1 }
 0x161   :  { %1429 = vsyncpa [#allocation3 + $0x1], 1 }

</bundles_post_ra>
